<compile_context>
chip_gen: v7x
topology: tpu7x:2x2x1
jax: 0.10.0
libtpu: 0.0.40
codegen_flags: <defaults>
</compile_context>

<pallas_src>
import math

import jax
import jax.numpy as jnp
import numpy as np
from jax.experimental import pallas as pl
from jax.experimental.pallas import tpu as pltpu

C_IN = 64
C_OUT = 64
KH = KW = 3


def conv_relu_kernel(a_ref, b_ref, w_ref, o_ref, xcol_ref):
    """One (batch, row-tile) grid step.

    a_ref:    (1, TH,  W+2, Cin) bf16 body rows of the zero-padded input
    b_ref:    (1, 2,   W+2, Cin) bf16 halo tail (padded rows TH, TH+1 of window)
    w_ref:    (9*Cin, Cout)      bf16 weights, K ordered (kh, kw, cin)
    o_ref:    (1, TH, W, Cout)
    xcol_ref: VMEM (TH, W, 9*Cin) bf16 im2col scratch
    """
    TH = o_ref.shape[1]
    W = o_ref.shape[2]

    # im2col: write each of the 9 taps straight from the input refs into the
    # scratch (no x_win / x_cat intermediates).  For tap kh the window rows
    # kh..kh+TH-1 come from the body block for the first TH-kh output rows and
    # from the 2-row halo tail for the last kh output rows.
    for kh in range(KH):
        for kw in range(KW):
            ck = (kh * KW + kw) * C_IN
            if TH > kh:
                xcol_ref[0:TH - kh, :, ck:ck + C_IN] = a_ref[0, kh:TH, kw:kw + W, :]
            if kh > 0:
                xcol_ref[TH - kh:TH, :, ck:ck + C_IN] = b_ref[0, 0:kh, kw:kw + W, :]

    # Single MXU matmul: (TH*W, 576) x (576, 64), f32 accumulation (no VMEM
    # accumulator roundtrip; there is no grid-axis reduction).
    y = jax.lax.dot_general(
        xcol_ref[...], w_ref[...],
        dimension_numbers=(((2,), (0,)), ((), ())),
        preferred_element_type=jnp.float32,
    )

    # TODO(synk): a lane-dense (TH, W*Cout) output slab would remove the
    # half-masked 64-lane stores, but the (TH*W, 64) matmul result would need
    # a sublane->lane relayout to get there; keep the natural layout until an
    # MLIR check shows that relayout is free.
    o_ref[0] = jnp.maximum(y, 0.0).astype(o_ref.dtype)


def _vmem_capacity_bytes(default=64 * 1024 * 1024):
    try:
        info = pltpu.get_tpu_info()
        return int(getattr(info, "vmem_capacity_bytes", default))
    except Exception:
        return default


def _per_row_vmem_bytes(W, out_itemsize):
    return (2 * (W + 2) * C_IN * 2              # body block, double buffered, bf16
            + W * KH * KW * C_IN * 2            # im2col scratch, bf16
            + W * C_OUT * 4                     # f32 matmul result
            + 2 * W * C_OUT * out_itemsize)     # output block, double buffered


def _pick_row_tile(H, W, n_batch, budget_bytes, out_itemsize):
    """Largest even divisor of H (preferring multiples of 8) whose per-tile
    VMEM footprint stays inside budget_bytes.  When N == 1, force >= 2 row
    tiles so a dual-TensorCore chip (v7x) always has >= 2 parallel steps."""
    per_row = _per_row_vmem_bytes(W, out_itemsize)
    cap = max(2, budget_bytes // per_row)
    if n_batch == 1 and H >= 4:
        cap = min(cap, H // 2)
    cap = min(cap, H)
    cands = [t for t in range(2, H + 1, 2) if H % t == 0 and t <= cap]
    if not cands:
        return H
    mult8 = [t for t in cands if t % 8 == 0]
    return max(mult8) if mult8 else max(cands)


def conv_relu_block(x_nchw, w_oihw):
    """Forward pass equivalent to Conv_ReLU_Block.forward (NCHW in / NCHW out)."""
    N, C, H, W = x_nchw.shape
    assert C == C_IN and w_oihw.shape == (C_OUT, C_IN, KH, KW)
    out_dtype = x_nchw.dtype
    out_itemsize = jnp.dtype(out_dtype).itemsize

    # TODO(synk): in a full DRRN stack keep activations NHWC + bf16 end-to-end
    # and fold the zero padding into the kernel so the transpose/pad/transpose
    # HBM roundtrips are paid once per network, not once per block.
    x_nhwc = jnp.transpose(x_nchw, (0, 2, 3, 1)).astype(jnp.bfloat16)

    # Zero padding (padding=1).  If H is odd, pad one extra bottom row so the
    # 2-row halo-tail blocks stay aligned; the extra output row is sliced off.
    h_extra = H % 2
    H_eff = H + h_extra
    x_pad = jnp.pad(x_nhwc, ((0, 0), (1, 1 + h_extra), (1, 1), (0, 0)))

    # (Cout, Cin, kh, kw) -> (kh*kw*Cin, Cout) bf16, hoisted out of the kernel.
    w_k = jnp.transpose(w_oihw, (2, 3, 1, 0)).reshape(KH * KW * C_IN, C_OUT)
    w_k = w_k.astype(jnp.bfloat16)

    # Scoped-VMEM budget: half the chip's VMEM (32 MiB on v7x, 64 MiB v5e/v6e).
    vmem_budget = _vmem_capacity_bytes() // 2
    TH = _pick_row_tile(H_eff, W, N, int(vmem_budget * 0.6), out_itemsize)
    assert TH % 2 == 0 and H_eff % TH == 0, (TH, H_eff)  # halo index map needs even TH
    n_row_tiles = H_eff // TH

    # Actual VMEM footprint (double-buffered in/out blocks, resident weights,
    # im2col scratch, f32 matmul result) -- no extra 2x over-count on top.
    a_bytes = TH * (W + 2) * C_IN * 2
    b_bytes = 2 * (W + 2) * C_IN * 2
    o_bytes = TH * W * C_OUT * out_itemsize
    w_bytes = KH * KW * C_IN * C_OUT * 2
    col_bytes = TH * W * KH * KW * C_IN * 2
    y_bytes = TH * W * C_OUT * 4
    need = 2 * (a_bytes + b_bytes + o_bytes) + w_bytes + col_bytes + y_bytes
    vmem_limit = int(min(max(int(need * 1.25), 16 * 1024 * 1024), vmem_budget))

    out_nhwc = pl.pallas_call(
        conv_relu_kernel,
        out_shape=jax.ShapeDtypeStruct((N, H_eff, W, C_OUT), out_dtype),
        grid_spec=pltpu.PrefetchScalarGridSpec(
            num_scalar_prefetch=0,
            grid=(N, n_row_tiles),
            in_specs=[
                # TH body rows of the padded image for this row tile.
                # TODO(synk): if DMA is still exposed after the bf16 switch,
                # set pipeline_mode=pl.Buffered(3) on this spec only.
                pl.BlockSpec((1, TH, W + 2, C_IN), lambda n, i: (n, i, 0, 0)),
                # 2-row halo tail: block index (i+1)*(TH//2) -> padded row (i+1)*TH.
                pl.BlockSpec((1, 2, W + 2, C_IN),
                             lambda n, i: (n, (i + 1) * (TH // 2), 0, 0)),
                # Weights: constant index map -> resident across all grid steps.
                pl.BlockSpec((KH * KW * C_IN, C_OUT), lambda n, i: (0, 0)),
            ],
            out_specs=pl.BlockSpec((1, TH, W, C_OUT), lambda n, i: (n, i, 0, 0)),
            scratch_shapes=[pltpu.VMEM((TH, W, KH * KW * C_IN), jnp.bfloat16)],
        ),
        compiler_params=pltpu.CompilerParams(
            dimension_semantics=("parallel", "parallel"),
            vmem_limit_bytes=vmem_limit,
        ),
    )(x_pad, x_pad, w_k)

    out_nhwc = out_nhwc[:, :H]
    # NHWC -> NCHW to match the PyTorch output convention.
    return jnp.transpose(out_nhwc, (0, 3, 1, 2))


def _reference(x_nchw, w_oihw):
    """Pure-JAX reference (same semantics as nn.Conv2d + ReLU)."""
    y = jax.lax.conv_general_dilated(
        x_nchw, w_oihw,
        window_strides=(1, 1),
        padding=((1, 1), (1, 1)),
        dimension_numbers=("NCHW", "OIHW", "NCHW"),
        precision=jax.lax.Precision.HIGHEST,
    )
    return jnp.maximum(y, 0.0)


if __name__ == "__main__":
    key = jax.random.PRNGKey(0)
    kx, kw = jax.random.split(key)

    # Small shapes consistent with the module: channels fixed at 64 by Conv2d.
    N, H, W = 2, 16, 16
    x = jax.random.normal(kx, (N, C_IN, H, W), dtype=jnp.float32)

    # Deterministic weight init (DRRN-style: N(0, sqrt(2 / (k*k*Cout)))).
    std = math.sqrt(2.0 / (KH * KW * C_OUT))
    w = std * jax.random.normal(kw, (C_OUT, C_IN, KH, KW), dtype=jnp.float32)

    out = jax.block_until_ready(conv_relu_block(x, w))
    ref = jax.block_until_ready(_reference(x, w))

    assert out.shape == (N, C_OUT, H, W)
    # bf16 activations/weights on the MXU (f32 accumulate) -> loose tolerance.
    np.testing.assert_allclose(np.asarray(out), np.asarray(ref), rtol=2e-2, atol=2e-2)

    print("KERNEL_OK")
</pallas_src>

<mosaic_0001>
module attributes {stable_mosaic.version = 11 : i64} {
  func.func @conv_relu_kernel(%arg0: i32, %arg1: i32, %arg2: memref<1x16x18x64xbf16, #tpu.memory_space<vmem>>, %arg3: memref<1x2x18x64xbf16, #tpu.memory_space<vmem>>, %arg4: memref<576x64xbf16, #tpu.memory_space<vmem>>, %arg5: memref<1x16x16x64xf32, #tpu.memory_space<vmem>>, %arg6: memref<16x16x576xbf16, #tpu.memory_space<vmem>>) attributes {dimension_semantics = [#tpu.dimension_semantics<parallel>, #tpu.dimension_semantics<parallel>], iteration_bounds = array<i64: 2, 1>, scalar_prefetch = 0 : i64, scratch_operands = 1 : i64, tpu.core_type = #tpu.core_type<tc>, window_params = [{transform_indices = @transform_0, window_bounds = array<i64: 1, 16, 18, 64>}, {transform_indices = @transform_1, window_bounds = array<i64: 1, 2, 18, 64>}, {pipeline_mode = #tpu.pipeline_mode<synchronous>, transform_indices = @transform_2, window_bounds = array<i64: 576, 64>}, {transform_indices = @transform_3, window_bounds = array<i64: 1, 16, 16, 64>}]} {
    %c0 = arith.constant 0 : index
    %c0_0 = arith.constant 0 : index
    %c0_1 = arith.constant 0 : index
    %c0_2 = arith.constant 0 : index
    %0 = vector.load %arg2[%c0, %c0_0, %c0_1, %c0_2] : memref<1x16x18x64xbf16, #tpu.memory_space<vmem>>, vector<1x16x16x64xbf16>
    %1 = vector.shape_cast %0 : vector<1x16x16x64xbf16> to vector<16x16x64xbf16>
    %c0_3 = arith.constant 0 : index
    %c0_4 = arith.constant 0 : index
    %c0_5 = arith.constant 0 : index
    %2 = vector.load %arg6[%c0_3, %c0_4, %c0_5] : memref<16x16x576xbf16, #tpu.memory_space<vmem>>, vector<16x16x64xbf16>
    tpu.vector_store %arg6[%c0_3, %c0_4, %c0_5], %1 {strides = array<i32>} : memref<16x16x576xbf16, #tpu.memory_space<vmem>>, vector<16x16x64xbf16>,
    %c0_6 = arith.constant 0 : index
    %c0_7 = arith.constant 0 : index
    %c1 = arith.constant 1 : index
    %c0_8 = arith.constant 0 : index
    %3 = vector.load %arg2[%c0_6, %c0_7, %c1, %c0_8] : memref<1x16x18x64xbf16, #tpu.memory_space<vmem>>, vector<1x16x16x64xbf16>
    %4 = vector.shape_cast %3 : vector<1x16x16x64xbf16> to vector<16x16x64xbf16>
    %c0_9 = arith.constant 0 : index
    %c0_10 = arith.constant 0 : index
    %c64 = arith.constant 64 : index
    %5 = vector.load %arg6[%c0_9, %c0_10, %c64] : memref<16x16x576xbf16, #tpu.memory_space<vmem>>, vector<16x16x64xbf16>
    tpu.vector_store %arg6[%c0_9, %c0_10, %c64], %4 {strides = array<i32>} : memref<16x16x576xbf16, #tpu.memory_space<vmem>>, vector<16x16x64xbf16>,
    %c0_11 = arith.constant 0 : index
    %c0_12 = arith.constant 0 : index
    %c2 = arith.constant 2 : index
    %c0_13 = arith.constant 0 : index
    %6 = vector.load %arg2[%c0_11, %c0_12, %c2, %c0_13] : memref<1x16x18x64xbf16, #tpu.memory_space<vmem>>, vector<1x16x16x64xbf16>
    %7 = vector.shape_cast %6 : vector<1x16x16x64xbf16> to vector<16x16x64xbf16>
    %c0_14 = arith.constant 0 : index
    %c0_15 = arith.constant 0 : index
    %c128 = arith.constant 128 : index
    %8 = vector.load %arg6[%c0_14, %c0_15, %c128] : memref<16x16x576xbf16, #tpu.memory_space<vmem>>, vector<16x16x64xbf16>
    tpu.vector_store %arg6[%c0_14, %c0_15, %c128], %7 {strides = array<i32>} : memref<16x16x576xbf16, #tpu.memory_space<vmem>>, vector<16x16x64xbf16>,
    %c0_16 = arith.constant 0 : index
    %c1_17 = arith.constant 1 : index
    %c0_18 = arith.constant 0 : index
    %c0_19 = arith.constant 0 : index
    %9 = vector.load %arg2[%c0_16, %c1_17, %c0_18, %c0_19] : memref<1x16x18x64xbf16, #tpu.memory_space<vmem>>, vector<1x15x16x64xbf16>
    %10 = vector.shape_cast %9 : vector<1x15x16x64xbf16> to vector<15x16x64xbf16>
    %c0_20 = arith.constant 0 : index
    %c0_21 = arith.constant 0 : index
    %c192 = arith.constant 192 : index
    %11 = vector.load %arg6[%c0_20, %c0_21, %c192] : memref<16x16x576xbf16, #tpu.memory_space<vmem>>, vector<15x16x64xbf16>
    tpu.vector_store %arg6[%c0_20, %c0_21, %c192], %10 {strides = array<i32>} : memref<16x16x576xbf16, #tpu.memory_space<vmem>>, vector<15x16x64xbf16>,
    %c0_22 = arith.constant 0 : index
    %c0_23 = arith.constant 0 : index
    %c0_24 = arith.constant 0 : index
    %c0_25 = arith.constant 0 : index
    %12 = vector.load %arg3[%c0_22, %c0_23, %c0_24, %c0_25] : memref<1x2x18x64xbf16, #tpu.memory_space<vmem>>, vector<1x1x16x64xbf16>
    %13 = vector.shape_cast %12 : vector<1x1x16x64xbf16> to vector<1x16x64xbf16>
    %c15 = arith.constant 15 : index
    %c0_26 = arith.constant 0 : index
    %c192_27 = arith.constant 192 : index
    %14 = vector.load %arg6[%c15, %c0_26, %c192_27] : memref<16x16x576xbf16, #tpu.memory_space<vmem>>, vector<1x16x64xbf16>
    tpu.vector_store %arg6[%c15, %c0_26, %c192_27], %13 {strides = array<i32>} : memref<16x16x576xbf16, #tpu.memory_space<vmem>>, vector<1x16x64xbf16>,
    %c0_28 = arith.constant 0 : index
    %c1_29 = arith.constant 1 : index
    %c1_30 = arith.constant 1 : index
    %c0_31 = arith.constant 0 : index
    %15 = vector.load %arg2[%c0_28, %c1_29, %c1_30, %c0_31] : memref<1x16x18x64xbf16, #tpu.memory_space<vmem>>, vector<1x15x16x64xbf16>
    %16 = vector.shape_cast %15 : vector<1x15x16x64xbf16> to vector<15x16x64xbf16>
    %c0_32 = arith.constant 0 : index
    %c0_33 = arith.constant 0 : index
    %c256 = arith.constant 256 : index
    %17 = vector.load %arg6[%c0_32, %c0_33, %c256] : memref<16x16x576xbf16, #tpu.memory_space<vmem>>, vector<15x16x64xbf16>
    tpu.vector_store %arg6[%c0_32, %c0_33, %c256], %16 {strides = array<i32>} : memref<16x16x576xbf16, #tpu.memory_space<vmem>>, vector<15x16x64xbf16>,
    %c0_34 = arith.constant 0 : index
    %c0_35 = arith.constant 0 : index
    %c1_36 = arith.constant 1 : index
    %c0_37 = arith.constant 0 : index
    %18 = vector.load %arg3[%c0_34, %c0_35, %c1_36, %c0_37] : memref<1x2x18x64xbf16, #tpu.memory_space<vmem>>, vector<1x1x16x64xbf16>
    %19 = vector.shape_cast %18 : vector<1x1x16x64xbf16> to vector<1x16x64xbf16>
    %c15_38 = arith.constant 15 : index
    %c0_39 = arith.constant 0 : index
    %c256_40 = arith.constant 256 : index
    %20 = vector.load %arg6[%c15_38, %c0_39, %c256_40] : memref<16x16x576xbf16, #tpu.memory_space<vmem>>, vector<1x16x64xbf16>
    tpu.vector_store %arg6[%c15_38, %c0_39, %c256_40], %19 {strides = array<i32>} : memref<16x16x576xbf16, #tpu.memory_space<vmem>>, vector<1x16x64xbf16>,
    %c0_41 = arith.constant 0 : index
    %c1_42 = arith.constant 1 : index
    %c2_43 = arith.constant 2 : index
    %c0_44 = arith.constant 0 : index
    %21 = vector.load %arg2[%c0_41, %c1_42, %c2_43, %c0_44] : memref<1x16x18x64xbf16, #tpu.memory_space<vmem>>, vector<1x15x16x64xbf16>
    %22 = vector.shape_cast %21 : vector<1x15x16x64xbf16> to vector<15x16x64xbf16>
    %c0_45 = arith.constant 0 : index
    %c0_46 = arith.constant 0 : index
    %c320 = arith.constant 320 : index
    %23 = vector.load %arg6[%c0_45, %c0_46, %c320] : memref<16x16x576xbf16, #tpu.memory_space<vmem>>, vector<15x16x64xbf16>
    tpu.vector_store %arg6[%c0_45, %c0_46, %c320], %22 {strides = array<i32>} : memref<16x16x576xbf16, #tpu.memory_space<vmem>>, vector<15x16x64xbf16>,
    %c0_47 = arith.constant 0 : index
    %c0_48 = arith.constant 0 : index
    %c2_49 = arith.constant 2 : index
    %c0_50 = arith.constant 0 : index
    %24 = vector.load %arg3[%c0_47, %c0_48, %c2_49, %c0_50] : memref<1x2x18x64xbf16, #tpu.memory_space<vmem>>, vector<1x1x16x64xbf16>
    %25 = vector.shape_cast %24 : vector<1x1x16x64xbf16> to vector<1x16x64xbf16>
    %c15_51 = arith.constant 15 : index
    %c0_52 = arith.constant 0 : index
    %c320_53 = arith.constant 320 : index
    %26 = vector.load %arg6[%c15_51, %c0_52, %c320_53] : memref<16x16x576xbf16, #tpu.memory_space<vmem>>, vector<1x16x64xbf16>
    tpu.vector_store %arg6[%c15_51, %c0_52, %c320_53], %25 {strides = array<i32>} : memref<16x16x576xbf16, #tpu.memory_space<vmem>>, vector<1x16x64xbf16>,
    %c0_54 = arith.constant 0 : index
    %c2_55 = arith.constant 2 : index
    %c0_56 = arith.constant 0 : index
    %c0_57 = arith.constant 0 : index
    %27 = vector.load %arg2[%c0_54, %c2_55, %c0_56, %c0_57] : memref<1x16x18x64xbf16, #tpu.memory_space<vmem>>, vector<1x14x16x64xbf16>
    %28 = vector.shape_cast %27 : vector<1x14x16x64xbf16> to vector<14x16x64xbf16>
    %c0_58 = arith.constant 0 : index
    %c0_59 = arith.constant 0 : index
    %c384 = arith.constant 384 : index
    %29 = vector.load %arg6[%c0_58, %c0_59, %c384] : memref<16x16x576xbf16, #tpu.memory_space<vmem>>, vector<14x16x64xbf16>
    tpu.vector_store %arg6[%c0_58, %c0_59, %c384], %28 {strides = array<i32>} : memref<16x16x576xbf16, #tpu.memory_space<vmem>>, vector<14x16x64xbf16>,
    %c0_60 = arith.constant 0 : index
    %c0_61 = arith.constant 0 : index
    %c0_62 = arith.constant 0 : index
    %c0_63 = arith.constant 0 : index
    %30 = vector.load %arg3[%c0_60, %c0_61, %c0_62, %c0_63] : memref<1x2x18x64xbf16, #tpu.memory_space<vmem>>, vector<1x2x16x64xbf16>
    %31 = vector.shape_cast %30 : vector<1x2x16x64xbf16> to vector<2x16x64xbf16>
    %c14 = arith.constant 14 : index
    %c0_64 = arith.constant 0 : index
    %c384_65 = arith.constant 384 : index
    %32 = vector.load %arg6[%c14, %c0_64, %c384_65] : memref<16x16x576xbf16, #tpu.memory_space<vmem>>, vector<2x16x64xbf16>
    tpu.vector_store %arg6[%c14, %c0_64, %c384_65], %31 {strides = array<i32>} : memref<16x16x576xbf16, #tpu.memory_space<vmem>>, vector<2x16x64xbf16>,
    %c0_66 = arith.constant 0 : index
    %c2_67 = arith.constant 2 : index
    %c1_68 = arith.constant 1 : index
    %c0_69 = arith.constant 0 : index
    %33 = vector.load %arg2[%c0_66, %c2_67, %c1_68, %c0_69] : memref<1x16x18x64xbf16, #tpu.memory_space<vmem>>, vector<1x14x16x64xbf16>
    %34 = vector.shape_cast %33 : vector<1x14x16x64xbf16> to vector<14x16x64xbf16>
    %c0_70 = arith.constant 0 : index
    %c0_71 = arith.constant 0 : index
    %c448 = arith.constant 448 : index
    %35 = vector.load %arg6[%c0_70, %c0_71, %c448] : memref<16x16x576xbf16, #tpu.memory_space<vmem>>, vector<14x16x64xbf16>
    tpu.vector_store %arg6[%c0_70, %c0_71, %c448], %34 {strides = array<i32>} : memref<16x16x576xbf16, #tpu.memory_space<vmem>>, vector<14x16x64xbf16>,
    %c0_72 = arith.constant 0 : index
    %c0_73 = arith.constant 0 : index
    %c1_74 = arith.constant 1 : index
    %c0_75 = arith.constant 0 : index
    %36 = vector.load %arg3[%c0_72, %c0_73, %c1_74, %c0_75] : memref<1x2x18x64xbf16, #tpu.memory_space<vmem>>, vector<1x2x16x64xbf16>
    %37 = vector.shape_cast %36 : vector<1x2x16x64xbf16> to vector<2x16x64xbf16>
    %c14_76 = arith.constant 14 : index
    %c0_77 = arith.constant 0 : index
    %c448_78 = arith.constant 448 : index
    %38 = vector.load %arg6[%c14_76, %c0_77, %c448_78] : memref<16x16x576xbf16, #tpu.memory_space<vmem>>, vector<2x16x64xbf16>
    tpu.vector_store %arg6[%c14_76, %c0_77, %c448_78], %37 {strides = array<i32>} : memref<16x16x576xbf16, #tpu.memory_space<vmem>>, vector<2x16x64xbf16>,
    %c0_79 = arith.constant 0 : index
    %c2_80 = arith.constant 2 : index
    %c2_81 = arith.constant 2 : index
    %c0_82 = arith.constant 0 : index
    %39 = vector.load %arg2[%c0_79, %c2_80, %c2_81, %c0_82] : memref<1x16x18x64xbf16, #tpu.memory_space<vmem>>, vector<1x14x16x64xbf16>
    %40 = vector.shape_cast %39 : vector<1x14x16x64xbf16> to vector<14x16x64xbf16>
    %c0_83 = arith.constant 0 : index
    %c0_84 = arith.constant 0 : index
    %c512 = arith.constant 512 : index
    %41 = vector.load %arg6[%c0_83, %c0_84, %c512] : memref<16x16x576xbf16, #tpu.memory_space<vmem>>, vector<14x16x64xbf16>
    tpu.vector_store %arg6[%c0_83, %c0_84, %c512], %40 {strides = array<i32>} : memref<16x16x576xbf16, #tpu.memory_space<vmem>>, vector<14x16x64xbf16>,
    %c0_85 = arith.constant 0 : index
    %c0_86 = arith.constant 0 : index
    %c2_87 = arith.constant 2 : index
    %c0_88 = arith.constant 0 : index
    %42 = vector.load %arg3[%c0_85, %c0_86, %c2_87, %c0_88] : memref<1x2x18x64xbf16, #tpu.memory_space<vmem>>, vector<1x2x16x64xbf16>
    %43 = vector.shape_cast %42 : vector<1x2x16x64xbf16> to vector<2x16x64xbf16>
    %c14_89 = arith.constant 14 : index
    %c0_90 = arith.constant 0 : index
    %c512_91 = arith.constant 512 : index
    %44 = vector.load %arg6[%c14_89, %c0_90, %c512_91] : memref<16x16x576xbf16, #tpu.memory_space<vmem>>, vector<2x16x64xbf16>
    tpu.vector_store %arg6[%c14_89, %c0_90, %c512_91], %43 {strides = array<i32>} : memref<16x16x576xbf16, #tpu.memory_space<vmem>>, vector<2x16x64xbf16>,
    %c0_92 = arith.constant 0 : index
    %c0_93 = arith.constant 0 : index
    %c0_94 = arith.constant 0 : index
    %45 = vector.load %arg6[%c0_92, %c0_93, %c0_94] : memref<16x16x576xbf16, #tpu.memory_space<vmem>>, vector<16x16x576xbf16>
    %c0_95 = arith.constant 0 : index
    %c0_96 = arith.constant 0 : index
    %46 = vector.load %arg4[%c0_95, %c0_96] : memref<576x64xbf16, #tpu.memory_space<vmem>>, vector<576x64xbf16>
    %cst = arith.constant dense<0.000000e+00> : vector<16x16x64xf32>
    %47 = tpu.matmul %45, %46, %cst {dimension_numbers = #tpu.dot_dimension_numbers<[2], [0], [0, 1], [1], [0, 0, 0, 1, 1, 1], [], []>} : vector<16x16x576xbf16>, vector<576x64xbf16>, vector<16x16x64xf32> -> vector<16x16x64xf32>
    %cst_97 = arith.constant 0.000000e+00 : f32
    %48 = vector.broadcast %cst_97 : f32 to vector<16x16x64xf32>
    %49 = arith.maximumf %47, %48 : vector<16x16x64xf32>
    %c0_98 = arith.constant 0 : index
    %c0_99 = arith.constant 0 : index
    %c0_100 = arith.constant 0 : index
    %c0_101 = arith.constant 0 : index
    %50 = vector.load %arg5[%c0_98, %c0_99, %c0_100, %c0_101] : memref<1x16x16x64xf32, #tpu.memory_space<vmem>>, vector<1x16x16x64xf32>
    %51 = vector.shape_cast %50 : vector<1x16x16x64xf32> to vector<16x16x64xf32>
    %52 = vector.shape_cast %49 : vector<16x16x64xf32> to vector<1x16x16x64xf32>
    tpu.vector_store %arg5[%c0_98, %c0_99, %c0_100, %c0_101], %52 {strides = array<i32>} : memref<1x16x16x64xf32, #tpu.memory_space<vmem>>, vector<1x16x16x64xf32>,
    return
  }
  func.func @transform_0(%arg0: i32, %arg1: i32) -> (i32, i32, i32, i32) {
    %c0_i32 = arith.constant 0 : i32
    %c0_i32_0 = arith.constant 0 : i32
    %c0_i32_1 = arith.constant 0 : i32
    return %arg0, %arg1, %c0_i32, %c0_i32_0 : i32, i32, i32, i32
  }
  func.func @transform_1(%arg0: i32, %arg1: i32) -> (i32, i32, i32, i32) {
    %c1_i32 = arith.constant 1 : i32
    %0 = arith.addi %arg1, %c1_i32 : i32
    %c8_i32 = arith.constant 8 : i32
    %1 = arith.muli %0, %c8_i32 : i32
    %c0_i32 = arith.constant 0 : i32
    %c0_i32_0 = arith.constant 0 : i32
    %c0_i32_1 = arith.constant 0 : i32
    return %arg0, %1, %c0_i32, %c0_i32_0 : i32, i32, i32, i32
  }
  func.func @transform_2(%arg0: i32, %arg1: i32) -> (i32, i32) {
    %c0_i32 = arith.constant 0 : i32
    %c0_i32_0 = arith.constant 0 : i32
    %c0_i32_1 = arith.constant 0 : i32
    return %c0_i32, %c0_i32_0 : i32, i32
  }
  func.func @transform_3(%arg0: i32, %arg1: i32) -> (i32, i32, i32, i32) {
    %c0_i32 = arith.constant 0 : i32
    %c0_i32_0 = arith.constant 0 : i32
    %c0_i32_1 = arith.constant 0 : i32
    return %arg0, %arg1, %c0_i32, %c0_i32_0 : i32, i32, i32, i32
  }
}

</mosaic_0001>

<bundles_post_ra>
// kernel: tpu_custom_call.1
= control target key start
LH: loop header
LB: loop body
LE: loop exit
PB: predicated region body
PF: predicated region fallthrough
CT: control target
= control target key end

     0   :  { %8 = vsyncpa [#allocation4], 0  ;;  %s6233_s0 = inlined_call_operand.vmem [shape: bf16[2,18,18,64], index: 0, kind: input, shape index: {}]   ;;  %s6234_s1 = inlined_call_operand.vmem [shape: bf16[2,18,18,64], index: 1, kind: input, shape index: {}]   ;;  %s6235_s2 = inlined_call_operand.vmem [shape: bf16[576,64], index: 2, kind: input, shape index: {}]   ;;  %s6236_s3 = inlined_call_operand.hbm [shape: f32[2,16,16,64], index: 3, kind: output, shape index: {}]  }
   0x1   :  { %10 = vsyncpa [#allocation4 + $0x1], 0  ;;  %s5182_s12 = smov 0   ;;  %s5184_s13 = smov 0  }
   0x2   :  { %s5186_s14 = smov 0   ;;  %s5188_s15 = smov 0  }
   0x3   :  { %s5190_s16 = smov 0   ;;  %s5192_s17 = smov 0  }
   0x4 LB: > { %s3901_s18 = sadd.s32 4294967295, %s5156_s17   ;;  %s3902_s19 = sadd.s32 4294967294, %s5156_s17   ;;  %s5156_s17 = sphi %s5192_s17, %s16_s17   ;;  %s5152_s16 = sphi %s5190_s16, %s6243_s16   ;;  %s5148_s15 = sphi %s5188_s15, %s6242_s15   ;;  %s5144_s14 = sphi %s5186_s14, %s6241_s14   ;;  %s5140_s13 = sphi %s5184_s13, %s6240_s13   ;;  %s5136_s12 = sphi %s5182_s12, %s6239_s12  }
   0x5   : > { %s28_s20 = sadd.s32 1, %s5152_s16  ;;  %s118_s21 = sadd.s32 1, %s5144_s14 }
   0x6   : > { %p30_p0 = scmp.ge.s32.totalorder %s28_s20, 2  ;;  %p128_p1 = scmp.ne.s32.totalorder %s5144_s14, %s5140_s13 }
   0x7   : > { %p129_p2 = scmp.eq.s32.totalorder %s3901_s18, 1  ;;  %p134_p3 = scmp.ne.s32.totalorder %s5140_s13, %s5136_s12 }
   0x8   : > { %s6245_s20 = smov (%p30_p0, %s28_s20), 0  ;;  %p135_p5 = scmp.eq.s32.totalorder %s3902_s19, 1 }
   0x9   : > { %p5222_p4 = por %p129_p2, %p128_p1  ;;  %s113_s23 = ssub.s32 %s5152_s16, %s6245_s20 }
   0xa   : > { %p3905_p6 = scmp.ge.s32.totalorder %s5156_s17, 1  ;;  %p116_p7 = scmp.eq.s32.totalorder %s113_s23, 0 }
   0xb   : > { %p5229_p8 = por %p135_p5, %p134_p3  ;;  %p198_p9 = scmp.lt.s32.totalorder %s5156_s17, 3 }
   0xc   : > { %s5235_s25 = scalar_select %p116_p7, %s5144_s14, %s118_s21  }
   0xd   : > { %p199_p10 = pnand %p3905_p6, %p198_p9 }
   0xe   : > { %p250_p11 = scmp.lt.s32.totalorder (!%p199_p10), %s5148_s15, 1  ;;  %v4882_v0 = vld [vmem:[%s6235_s2 + $0x40] sm:$0xff] (!%p199_p10)   ;;  %v4884_v2 = vld [vmem:[%s6235_s2 + $0x48] sm:$0xff] (!%p199_p10)   ;;  %v4890_v4 = vld [vmem:[%s6235_s2 + $0x50] sm:$0xff] (!%p199_p10)   ;;  %vm603_vm0 = vsmask.f32 (!%p199_p10), 7424 }
   0xf   : > { %202 = sbr.rel (%p199_p10) target bundleno = 551 (0x227), region = 32  ;;  %4725 = vmatprep.subr.bf16.mxu1 (!%p199_p10), %v4882_v0  ;;  %v4883_v1 = vld [vmem:[%s6235_s2] sm:$0xff] (!%p199_p10)   ;;  %4441 = vmatprep.subr.bf16.mxu0 (!%p199_p10), %v4882_v0  ;;  %v4885_v3 = vld [vmem:[%s6235_s2 + $0x8] sm:$0xff] (!%p199_p10)   ;;  %v4891_v5 = vld [vmem:[%s6235_s2 + $0x10] sm:$0xff] (!%p199_p10)   ;;  %s5158_s26 = smov (!%p199_p10), 64   ;;  %vm1037_vm1 = vcmask (!%p199_p10), 1046528  }
  0x10   : > { %4733 = vmatpush3.bf16.msra.mxu1 (!%p199_p10), %v4883_v1  ;;  %4442 = vmatpush3.bf16.msra.mxu0 (!%p199_p10), %v4883_v1  ;;  %vm410_vm2 = vcmask (!%p199_p10), 523264   ;;  %vm844_vm3 = vcmask (!%p199_p10), 1048064   ;;  %s4440_s8 = sshll.u32 (!%p199_p10), %s5148_s15, 12  ;;  %s5159_s23 = smov (!%p199_p10), [#allocation3]  }
  0x11   : > { %4726 = vmatprep.subr.bf16.mxu1 (!%p199_p10), %v4884_v2  ;;  %4443 = vmatprep.subr.bf16.mxu0 (!%p199_p10), %v4884_v2  ;;  %s6175_s18 = scalar_lea.hbm (!%p199_p10), %s6236_s3, %s4440_s8 }
  0x14   : > { %4734 = vmatpush3.bf16.msra.mxu1 (!%p199_p10), %v4885_v3  ;;  %4444 = vmatpush3.bf16.msra.mxu0 (!%p199_p10), %v4885_v3 }
  0x15   : > { %4727 = vmatprep.subr.bf16.mxu1 (!%p199_p10), %v4890_v4  ;;  %4445 = vmatprep.subr.bf16.mxu0 (!%p199_p10), %v4890_v4 }
  0x16   : > { %s5242_s28 = scalar_select %p250_p11, %s5148_s15, 1 }
  0x18   : > { %s4741_s6 = smul.u32 216, %s5242_s28  ;;  %4735 = vmatpush3.bf16.msra.mxu1 %v4891_v5  ;;  %4446 = vmatpush3.bf16.msra.mxu0 %v4891_v5 }
  0x1a   : > { %s5262_s19 = scalar_lea.vmem %s6233_s0, %s4741_s6  ;;  %s5280_s27 = sadd.s32 192, %s4741_s6 }
  0x1b   : > { %v4802_v6 = vld [vmem:[%s5262_s19 + $0x9c] sm:$0xff]   ;;  %v4803_v7 = vld [vmem:[%s5262_s19 + $0xc] sm:$0xff]   ;;  %v4805_v9 = vld [vmem:[%s5262_s19 + $0x98] ss:$0 sps:$4 sm:$0x11]   ;;  %s5302_s30 = scalar_lea.vmem %s6234_s1, %s5280_s27  ;;  %s5082_s27 = sshll.u32 %s5159_s23, 4  ;;  %s5083_s27 = int_to_ptr.vmem [resolvable:$false] %s5082_s27 }
  0x1c   : > { %1248 = vrot.lane.b32.xlu0 %v4802_v6, %s5158_s26  ;;  %1224 = vrot.lane.b32.xlu1 %v4803_v7, %s5158_s26  ;;  %v4804_v8 = vld [vmem:[%s5262_s19 + $0x90] sm:$0xff]   ;;  %v4806_v10 = vld [vmem:[%s5262_s19] sm:$0xff]   ;;  %v756_v13 = vshll.u32 %v4805_v9, 16  ;;  %s5084_s28 = scalar_lea.vmem %s5083_s27, 8192 }
  0x1d   : > { %v749_v11 = vshrl.u32 %v4804_v8, 16  ;;  %v751_v12 = vshll.u32 %v4804_v8, 16  ;;  %v4807_v14 = vld [vmem:[%s5262_s19 + $0x8] ss:$0 sps:$4 sm:$0x11]   ;;  %v605_v15 = vshrl.u32 %v4806_v10, 16 }
  0x1e   : > { %v607_v16 = vshll.u32 %v4806_v10, 16  ;;  %v758_v18 = vrot.slane %v756_v13, 1  ;;  %v612_v19 = vshll.u32 %v4807_v14, 16  ;;  %v4809_v21 = vld [vmem:[%s5262_s19 + $0x9c] sm:$0xff]   ;;  %v4812_v28 = vld [vmem:[%s5262_s19 + $0xc] sm:$0xff]   ;;  %v4814_v53 = vld [vmem:[%s5262_s19 + $0xb4] sm:$0xff]  }
  0x1f   : > { %v753_v17 = vrot.slane %v751_v12, 1  ;;  %v4810_v24 = vld [vmem:[%s5262_s19 + $0xa4] ss:$0 sps:$4 sm:$0x11]   ;;  %v761_v26 = vshrl.u32 %v4809_v21, 16  ;;  %v763_v27 = vshll.u32 %v4809_v21, 16 }
  0x20   : > { %v609_v20 = vrot.slane %v607_v16, 1  ;;  %v614_v23 = vrot.slane %v612_v19, 1  ;;  %v4808_v30 = vld [vmem:[%s5262_s19 + $0xa8] sm:$0xff]   ;;  %v768_v31 = vshll.u32 %v4810_v24, 16  ;;  %v617_v36 = vshrl.u32 %v4812_v28, 16  ;;  %v4811_v40 = vld [vmem:[%s5262_s19 + $0x18] sm:$0xff]  }
  0x21   : > { %v754_v22 = vor.u32 %v753_v17, %v749_v11  ;;  %v765_v33 = vrot.slane %v763_v27, 1  ;;  %v4813_v34 = vld [vmem:[%s5262_s19 + $0x14] ss:$0 sps:$4 sm:$0x11]   ;;  %v619_v37 = vshll.u32 %v4812_v28, 16  ;;  %v4815_v38 = vld [vmem:[%s5262_s19 + $0xa8] sm:$0xff]  }
  0x22   : > { %v610_v25 = vor.u32 %v609_v20, %v605_v15  ;;  %v770_v35 = vrot.slane %v768_v31, 1  ;;  %v624_v41 = vshll.u32 %v4813_v34, 16  ;;  %v773_v43 = vshrl.u32 %v4815_v38, 16  ;;  %v4816_v46 = vld [vmem:[%s5262_s19 + $0xb0] ss:$0 sps:$4 sm:$0x11]  }
  0x23   : > { %v759_v29 = vsel %vm603_vm0, %v754_v22, %v758_v18  ;;  %v766_v39 = vor.u32 %v765_v33, %v761_v26  ;;  %v621_v42 = vrot.slane %v619_v37, 1  ;;  %v775_v47 = vshll.u32 %v4815_v38, 16  ;;  %v4818_v48 = vld [vmem:[%s5262_s19 + $0x18] sm:$0xff]   ;;  %v4819_v54 = vld [vmem:[%s5262_s19 + $0x20] ss:$0 sps:$4 sm:$0x11]  }
  0x24   : > { %820 = vrot.lane.b32.xlu0 %v759_v29, %s5158_s26  ;;  %v615_v32 = vsel %vm603_vm0, %v610_v25, %v614_v23  ;;  %v626_v45 = vrot.slane %v624_v41, 1  ;;  %v780_v51 = vshll.u32 %v4816_v46, 16  ;;  %v629_v55 = vshrl.u32 %v4818_v48, 16  ;;  %v4821_v59 = vld [vmem:[%s5262_s19 + $0xb4] sm:$0xff]   ;;  %v4817_v4 = vld [vmem:[%s5262_s19 + $0x24] sm:$0xff]   ;;  %v4830_v46 = vld [vmem:[%s5262_s19 + $0x3c] sm:$0xff]  }
  0x25   : > { %796 = vrot.lane.b32.xlu1 %v615_v32, %s5158_s26  ;;  %v771_v44 = vsel %vm603_vm0, %v766_v39, %v770_v35  ;;  %v622_v49 = vor.u32 %v621_v42, %v617_v36  ;;  %v777_v50 = vrot.slane %v775_v47, 1  ;;  %v631_v56 = vshll.u32 %v4818_v48, 16  ;;  %v4822_v63 = vld [vmem:[%s5262_s19 + $0xbc] ss:$0 sps:$4 sm:$0x11]   ;;  %v4824_v7 = vld [vmem:[%s5262_s19 + $0x24] sm:$0xff]  }
  0x26   : > { %v782_v58 = vrot.slane %v780_v51, 1  ;;  %v636_v61 = vshll.u32 %v4819_v54, 16  ;;  %v785_v0 = vshrl.u32 %v4821_v59, 16  ;;  %v787_v3 = vshll.u32 %v4821_v59, 16  ;;  %v4820_v11 = vld [vmem:[%s5302_s30] sm:$0xff]   ;;  %v4826_v15 = vld [vmem:[%s5262_s19 + $0x18] sm:$0xff]  }
  0x27   : > { %v627_v52 = vsel %vm603_vm0, %v622_v49, %v626_v45  ;;  %v778_v57 = vor.u32 %v777_v50, %v773_v43  ;;  %v633_v60 = vrot.slane %v631_v56, 1  ;;  %v792_v5 = vshll.u32 %v4822_v63, 16  ;;  %v4825_v10 = vld [vmem:[%s5262_s19 + $0x2c] ss:$0 sps:$4 sm:$0x11]   ;;  %v4831_v21 = vld [vmem:[%s5262_s19 + $0x30] sm:$0xff]  }
  0x28   : > { %1250 = vrot.lane.b32.xlu0 %v4808_v30, %s5158_s26  ;;  %v638_v2 = vrot.slane %v636_v61, 1  ;;  %v789_v6 = vrot.slane %v787_v3, 1  ;;  %v641_v13 = vshrl.u32 %v4824_v7, 16  ;;  %v643_v14 = vshll.u32 %v4824_v7, 16  ;;  %v4823_v23 = vld [vmem:[%s5262_s19 + $0x30] sm:$0xff]   ;;  %v4833_v38 = vld [vmem:[%s5262_s19 + $0x24] sm:$0xff]  }
  0x29   : > { %822 = vrot.lane.b32.xlu1 %v771_v44, %s5158_s26  ;;  %v783_v62 = vsel %vm603_vm0, %v778_v57, %v782_v58  ;;  %v634_v1 = vor.u32 %v633_v60, %v629_v55  ;;  %v794_v9 = vrot.slane %v792_v5, 1  ;;  %v648_v16 = vshll.u32 %v4825_v10, 16  ;;  %v4827_v17 = vld [vmem:[%s5262_s19 + $0x20] ss:$0 sps:$4 sm:$0x11]   ;;  %v4840_v60 = vld [vmem:[%s5262_s19 + $0x30] sm:$0xff]  }
  0x2a   : > { %v790_v12 = vor.u32 %v789_v6, %v785_v0  ;;  %v645_v18 = vrot.slane %v643_v14, 1  ;;  %v2285_v19 = vshrl.u32 %v4826_v15, 16  ;;  %v2287_v20 = vshll.u32 %v4826_v15, 16  ;;  %v4828_v26 = vld [vmem:[%s5262_s19 + $0xc] sm:$0xfe]   ;;  %v4838_v57 = vld [vmem:[%s5262_s19 + $0x3c] sm:$0xff]  }
  0x2b   : > { %v639_v8 = vsel %vm603_vm0, %v634_v1, %v638_v2  ;;  %v650_v24 = vrot.slane %v648_v16, 1  ;;  %v2292_v25 = vshll.u32 %v4827_v17, 16  ;;  %v4829_v29 = vld [vmem:[%s5262_s19 + $0x14] ss:$0 sps:$4 sm:$0x11]   ;;  %v1861_v31 = vrot.slane %v4828_v26, 1 }
  0x2c   : > { %1226 = vrot.lane.b32.xlu0 %v4811_v40, %s5158_s26  ;;  %v795_v22 = vsel %vm603_vm0, %v790_v12, %v794_v9  ;;  %v646_v27 = vor.u32 %v645_v18, %v641_v13  ;;  %v2289_v28 = vrot.slane %v2287_v20, 1  ;;  %v1862_v33 = vrot.slane %v4829_v29, 1  ;;  %v4832_v36 = vld [vmem:[%s5262_s19 + $0x38] ss:$0 sps:$4 sm:$0x11]   ;;  %v4837_v6 = vld [vmem:[%s5262_s19 + $0x48] sm:$0xff]  }
  0x2d   : > { %798 = vrot.lane.b32.xlu1 %v627_v52, %s5158_s26  ;;  %v2294_v30 = vrot.slane %v2292_v25, 1  ;;  %v653_v34 = vshrl.u32 %v4831_v21, 16  ;;  %v655_v37 = vshll.u32 %v4831_v21, 16  ;;  %v660_v40 = vshll.u32 %v4832_v36, 16  ;;  %v4835_v50 = vld [vmem:[%s5262_s19 + $0x18] sm:$0xfe]  }
  0x2e   : > { %v2290_v32 = vor.u32 %v2289_v28, %v2285_v19  ;;  %v651_v35 = vsel %vm603_vm0, %v646_v27, %v650_v24  ;;  %v4834_v41 = vld [vmem:[%s5262_s19 + $0x2c] ss:$0 sps:$4 sm:$0x11]   ;;  %v2297_v43 = vshrl.u32 %v4833_v38, 16  ;;  %v2299_v44 = vshll.u32 %v4833_v38, 16  ;;  %v4847_v14 = vld [vmem:[%s5262_s19 + $0x3c] sm:$0xff]  }
  0x2f   : > { %v657_v39 = vrot.slane %v655_v37, 1  ;;  %v1863_v45 = vsel %vm1037_vm1, %v1861_v31, %v1862_v33  ;;  %v662_v48 = vrot.slane %v660_v40, 1  ;;  %v2304_v49 = vshll.u32 %v4834_v41, 16  ;;  %v4836_v52 = vld [vmem:[%s5262_s19 + $0x20] ss:$0 sps:$4 sm:$0x11]  }
  0x30   : > { %1252 = vrot.lane.b32.xlu0 %v4814_v53, %s5158_s26  ;;  %v2295_v42 = vsel %vm603_vm0, %v2290_v32, %v2294_v30  ;;  %v2301_v51 = vrot.slane %v2299_v44, 1  ;;  %v1864_v54 = vrot.slane %v4835_v50, 1  ;;  %v1865_v56 = vrot.slane %v4836_v52, 1  ;;  %v4839_v59 = vld [vmem:[%s5262_s19 + $0x44] ss:$0 sps:$4 sm:$0x11]  }
  0x31   : > { %824 = vrot.lane.b32.xlu1 %v783_v62, %s5158_s26  ;;  %v658_v47 = vor.u32 %v657_v39, %v653_v34  ;;  %v2306_v53 = vrot.slane %v2304_v49, 1  ;;  %v665_v61 = vshrl.u32 %v4838_v57, 16  ;;  %v667_v62 = vshll.u32 %v4838_v57, 16  ;;  %v4841_v0 = vld [vmem:[%s5262_s19 + $0x38] ss:$0 sps:$4 sm:$0x11]  }
  0x32   : > { %v2302_v55 = vor.u32 %v2301_v51, %v2297_v43  ;;  %v672_v63 = vshll.u32 %v4839_v59, 16  ;;  %v2311_v1 = vshll.u32 %v4840_v60, 16  ;;  %v1866_v5 = vsel %vm1037_vm1, %v1864_v54, %v1865_v56  ;;  %v4845_v10 = vld [vmem:[%s5262_s19 + $0x48] sm:$0xff]   ;;  %v4846_v21 = vld [vmem:[%s5262_s19 + $0x50] ss:$0 sps:$4 sm:$0x11]  }
  0x33   : > { %v663_v58 = vsel %vm603_vm0, %v658_v47, %v662_v48  ;;  %v669_v3 = vrot.slane %v667_v62, 1  ;;  %v2316_v9 = vshll.u32 %v4841_v0, 16  ;;  %v4842_v12 = vld [vmem:[%s5262_s19 + $0x24] sm:$0xfe]   ;;  %v677_v16 = vshrl.u32 %v4845_v10, 16  ;;  %v4844_v30 = vld [vmem:[%s5262_s19 + $0x54] sm:$0xff]  }
  0x34   : > { %1228 = vrot.lane.b32.xlu0 %v4817_v4, %s5158_s26  ;;  %v2307_v2 = vsel %vm603_vm0, %v2302_v55, %v2306_v53  ;;  %v2309_v4 = vshrl.u32 %v4840_v60, 16  ;;  %v674_v7 = vrot.slane %v672_v63, 1  ;;  %v4843_v13 = vld [vmem:[%s5262_s19 + $0x2c] ss:$0 sps:$4 sm:$0x11]   ;;  %v1867_v18 = vrot.slane %v4842_v12, 1 }
  0x35   : > { %800 = vrot.lane.b32.xlu1 %v639_v8, %s5158_s26  ;;  %v2313_v8 = vrot.slane %v2311_v1, 1  ;;  %v2318_v15 = vrot.slane %v2316_v9, 1  ;;  %v1868_v19 = vrot.slane %v4843_v13, 1  ;;  %v684_v24 = vshll.u32 %v4846_v21, 16  ;;  %v4849_v34 = vld [vmem:[%s5262_s19 + $0x30] sm:$0xfe]  }
  0x36   : > { %v4848_v25 = vld [vmem:[%s5262_s19 + $0x44] ss:$0 sps:$4 sm:$0x11]   ;;  %v2321_v27 = vshrl.u32 %v4847_v14, 16  ;;  %v2323_v28 = vshll.u32 %v4847_v14, 16  ;;  %v1870_v38 = vrot.slane %v4849_v34, 1 }
  0x37   : > { %v2314_v17 = vor.u32 %v2313_v8, %v2309_v4  ;;  %v1869_v29 = vsel %vm1037_vm1, %v1867_v18, %v1868_v19  ;;  %v686_v32 = vrot.slane %v684_v24, 1  ;;  %v2328_v33 = vshll.u32 %v4848_v25, 16  ;;  %v4850_v36 = vld [vmem:[%s5262_s19 + $0x38] ss:$0 sps:$4 sm:$0x11]   ;;  %v4854_v44 = vld [vmem:[%s5262_s19 + $0x48] sm:$0xff]  }
  0x38   : > { %1291 = vrot.lane.b32.xlu0 %v4820_v11, %s5158_s26  ;;  %v670_v11 = vor.u32 %v669_v3, %v665_v61  ;;  %v1871_v40 = vrot.slane %v4850_v36, 1  ;;  %v4852_v41 = vld [vmem:[%s5262_s19 + $0x54] sm:$0xff]   ;;  %v4853_v43 = vld [vmem:[%s5262_s19 + $0x5c] ss:$0 sps:$4 sm:$0x11]   ;;  %v2335_v49 = vshll.u32 %v4854_v44, 16 }
  0x39   : > { %826 = vrot.lane.b32.xlu1 %v795_v22, %s5158_s26  ;;  %v679_v22 = vshll.u32 %v4845_v10, 16  ;;  %v2319_v26 = vsel %vm603_vm0, %v2314_v17, %v2318_v15  ;;  %v2330_v37 = vrot.slane %v2328_v33, 1  ;;  %v696_v47 = vshll.u32 %v4853_v43, 16  ;;  %v4855_v48 = vld [vmem:[%s5262_s19 + $0x50] ss:$0 sps:$4 sm:$0x11]  }
  0x3a   : > { %v675_v20 = vsel %vm603_vm0, %v670_v11, %v674_v7  ;;  %v2333_v52 = vshrl.u32 %v4854_v44, 16  ;;  %v1872_v53 = vsel %vm1037_vm1, %v1870_v38, %v1871_v40  ;;  %v4851_v54 = vld [vmem:[%s5262_s19 + $0x60] sm:$0xff]   ;;  %v2337_v56 = vrot.slane %v2335_v49, 1  ;;  %v4861_v62 = vld [vmem:[%s5262_s19 + $0x54] sm:$0xff]   ;;  %v4858_v14 = vld [vmem:[%s5262_s19 + $0x6c] sm:$0xff]  }
  0x3b   : > { %v698_v55 = vrot.slane %v696_v47, 1  ;;  %v2340_v57 = vshll.u32 %v4855_v48, 16  ;;  %v4856_v60 = vld [vmem:[%s5262_s19 + $0x3c] sm:$0xfe]   ;;  %v2345_v11 = vshrl.u32 %v4861_v62, 16  ;;  %v2347_v12 = vshll.u32 %v4861_v62, 16 }
  0x3c   : > { %1230 = vrot.lane.b32.xlu0 %v4823_v23, %s5158_s26  ;;  %v681_v23 = vrot.slane %v679_v22, 1  ;;  %v4857_v61 = vld [vmem:[%s5262_s19 + $0x44] ss:$0 sps:$4 sm:$0x11]   ;;  %v2338_v1 = vor.u32 %v2337_v56, %v2333_v52  ;;  %v4863_v18 = vld [vmem:[%s5262_s19 + $0x48] sm:$0xfe]  }
  0x3d   : > { %802 = vrot.lane.b32.xlu1 %v651_v35, %s5158_s26  ;;  %v2325_v35 = vrot.slane %v2323_v28, 1  ;;  %v2342_v63 = vrot.slane %v2340_v57, 1  ;;  %v1874_v3 = vrot.slane %v4857_v61, 1  ;;  %v4862_v9 = vld [vmem:[%s5262_s19 + $0x5c] ss:$0 sps:$4 sm:$0x11]  }
  0x3e   : > { %v682_v31 = vor.u32 %v681_v23, %v677_v16  ;;  %v2352_v17 = vshll.u32 %v4862_v9, 16  ;;  %v2349_v19 = vrot.slane %v2347_v12, 1  ;;  %v1876_v22 = vrot.slane %v4863_v18, 1  ;;  %v4866_v25 = vld [vmem:[%s5262_s19 + $0x6c] sm:$0xff]   ;;  %v4868_v28 = vld [vmem:[%s5262_s19 + $0x60] sm:$0xff]   ;;  %v4865_v38 = vld [vmem:[%s5262_s19 + $0x78] sm:$0xff]  }
  0x3f   : > { %v2326_v39 = vor.u32 %v2325_v35, %v2321_v27  ;;  %v2343_v10 = vsel %vm603_vm0, %v2338_v1, %v2342_v63  ;;  %v4867_v27 = vld [vmem:[%s5262_s19 + $0x74] ss:$0 sps:$4 sm:$0x11]   ;;  %v2359_v33 = vshll.u32 %v4868_v28, 16  ;;  %v2357_v36 = vshrl.u32 %v4868_v28, 16  ;;  %v4872_v62 = vld [vmem:[%s5262_s19 + $0x84] sm:$0xff]  }
  0x40   : > { %2452 = vrot.lane.b32.xlu0 %v2295_v42, %s5158_s26  ;;  %v687_v42 = vsel %vm603_vm0, %v682_v31, %v686_v32  ;;  %v2354_v21 = vrot.slane %v2352_v17, 1  ;;  %v2350_v23 = vor.u32 %v2349_v19, %v2345_v11  ;;  %v720_v31 = vshll.u32 %v4867_v27, 16  ;;  %v4869_v32 = vld [vmem:[%s5262_s19 + $0x68] ss:$0 sps:$4 sm:$0x11]   ;;  %v4886_v12 = vld [vmem:[%s5262_s19 + $0x78] sm:$0xff]  }
  0x41   : > { %1906 = vrot.lane.b32.xlu1 %v1863_v45, %s5158_s26  ;;  %v689_v45 = vshrl.u32 %v4852_v41, 16  ;;  %v2331_v50 = vsel %vm603_vm0, %v2326_v39, %v2330_v37  ;;  %v2361_v40 = vrot.slane %v2359_v33, 1  ;;  %v4870_v44 = vld [vmem:[%s5262_s19 + $0x54] sm:$0xfe]   ;;  %v4880_v9 = vld [vmem:[%s5262_s19 + $0x84] sm:$0xff]   ;;  %v2381_v17 = vshrl.u32 %v4886_v12, 16 }
  0x42   : > { %v2355_v34 = vsel %vm603_vm0, %v2350_v23, %v2354_v21  ;;  %v722_v39 = vrot.slane %v720_v31, 1  ;;  %v4876_v57 = vld [vmem:[%s5262_s19 + $0x74] ss:$0 sps:$4 sm:$0x11]   ;;  %v2383_v18 = vshll.u32 %v4886_v12, 16  ;;  %v4892_v21 = vld [vmem:[%s6235_s2 + $0x58] sm:$0xff]  }
  0x43   : > { %v2362_v49 = vor.u32 %v2361_v40, %v2357_v36  ;;  %v2376_v1 = vshll.u32 %v4876_v57, 16  ;;  %v4881_v11 = vld [vmem:[%s5262_s19 + $0x8c] ss:$0 sps:$4 sm:$0x11]   ;;  %v4879_v23 = vld [vmem:[%s5262_s19 + $0x90] sm:$0xff]   ;;  %v4893_v27 = vld [vmem:[%s6235_s2 + $0x18] sm:$0xff]   ;;  %4728 = vmatprep.subr.bf16.mxu1 %v4892_v21  ;;  %4447 = vmatprep.subr.bf16.mxu0 %v4892_v21 }
  0x44   : > { %1232 = vrot.lane.b32.xlu0 %v4830_v46, %s5158_s26  ;;  %v691_v46 = vshll.u32 %v4852_v41, 16  ;;  %v2364_v41 = vshll.u32 %v4869_v32, 16  ;;  %v4894_v31 = vld [vmem:[%s5262_s19 + $0x84] sm:$0xff]   ;;  %4736 = vmatpush3.bf16.msra.mxu1 %v4893_v27  ;;  %v4895_v40 = vld [vmem:[%s5262_s19 + $0x8c] ss:$0 sps:$4 sm:$0x11]  }
  0x45   : > { %804 = vrot.lane.b32.xlu1 %v663_v58, %s5158_s26  ;;  %v4859_v58 = vld [vmem:[%s5262_s19 + $0x60] sm:$0xff]   ;;  %4448 = vmatpush3.bf16.msra.mxu0 %v4893_v27  ;;  %v4902_v57 = vld [vmem:[%s5262_s19 + $0x98] ss:$0 sps:$4 sm:$0x11]  }
  0x46   : > { %v693_v51 = vrot.slane %v691_v46, 1  ;;  %v701_v0 = vshrl.u32 %v4859_v58, 16  ;;  %v4875_v46 = vld [vmem:[%s5262_s19 + $0x6c] sm:$0xff]   ;;  %v2366_v47 = vrot.slane %v2364_v41, 1  ;;  %v4898_v33 = vld [vmem:[%s6235_s2 + $0x60] sm:$0xff]  }
  0x47   : > { %4729 = vmatprep.subr.bf16.mxu1 %v4898_v33  ;;  %4449 = vmatprep.subr.bf16.mxu0 %v4898_v33  ;;  %v4899_v41 = vld [vmem:[%s6235_s2 + $0x20] sm:$0xff]  }
  0x48   : > { %2454 = vrot.lane.b32.xlu0 %v2307_v2, %s5158_s26  ;;  %v694_v59 = vor.u32 %v693_v51, %v689_v45  ;;  %v1873_v2 = vrot.slane %v4856_v60, 1  ;;  %v4871_v45 = vld [vmem:[%s5262_s19 + $0x5c] ss:$0 sps:$4 sm:$0x11]   ;;  %v2371_v60 = vshll.u32 %v4875_v46, 16  ;;  %4737 = vmatpush3.bf16.msra.mxu1 %v4899_v41  ;;  %v4913_v21 = vld [vmem:[%s5262_s19] sm:$0xff]  }
  0x49   : > { %1908 = vrot.lane.b32.xlu1 %v1866_v5, %s5158_s26  ;;  %v4860_v5 = vld [vmem:[%s5262_s19 + $0x68] ss:$0 sps:$4 sm:$0x11]   ;;  %v1880_v51 = vrot.slane %v4871_v45, 1  ;;  %v2400_v45 = vshll.u32 %v4895_v40, 16  ;;  %4450 = vmatpush3.bf16.msra.mxu0 %v4899_v41  ;;  %411 = vst.msk [vmem:[#allocation2] sm:$0xff] %vm410_vm2, %v4913_v21 }
  0x4a   : > { %v699_v4 = vsel %vm603_vm0, %v694_v59, %v698_v55  ;;  %v708_v8 = vshll.u32 %v4860_v5, 16  ;;  %v1875_v13 = vsel %vm1037_vm1, %v1873_v2, %v1874_v3  ;;  %v2369_v59 = vshrl.u32 %v4875_v46, 16  ;;  %v4877_v2 = vld [vmem:[%s5262_s19 + $0x60] sm:$0xfe]   ;;  %v4896_v46 = vld [vmem:[%s5262_s19 + $0x78] sm:$0xfe]  }
  0x4b   : > { %v2373_v3 = vrot.slane %v2371_v60, 1  ;;  %v2378_v5 = vrot.slane %v2376_v1, 1  ;;  %v4910_v60 = vld [vmem:[%s6235_s2 + $0x70] sm:$0xff]   ;;  %v4918_v27 = vld [vmem:[%s5262_s19 + $0x9c] sm:$0xff]  }
  0x4c   : > { %1234 = vrot.lane.b32.xlu0 %v4837_v6, %s5158_s26  ;;  %v703_v6 = vshll.u32 %v4859_v58, 16  ;;  %v710_v16 = vrot.slane %v708_v8, 1  ;;  %v2367_v58 = vsel %vm603_vm0, %v2362_v49, %v2366_v47  ;;  %v4897_v47 = vld [vmem:[%s5262_s19 + $0x80] ss:$0 sps:$4 sm:$0x11]  }
  0x4d   : > { %806 = vrot.lane.b32.xlu1 %v675_v20, %s5158_s26  ;;  %v4864_v20 = vld [vmem:[%s5262_s19 + $0x50] ss:$0 sps:$4 sm:$0x11]   ;;  %v4920_v33 = vld [vmem:[%s5262_s19 + $0x9c] sm:$0xff]  }
  0x4e   : > { %v705_v7 = vrot.slane %v703_v6, 1  ;;  %v1877_v24 = vrot.slane %v4864_v20, 1  ;;  %v1882_v6 = vrot.slane %v4877_v2, 1  ;;  %424 = vst.msk [vmem:[#allocation2 + $0x208] sm:$0xff] %vm410_vm2, %v4920_v33 }
  0x50   : > { %2456 = vrot.lane.b32.xlu0 %v2319_v26, %s5158_s26  ;;  %v706_v15 = vor.u32 %v705_v7, %v701_v0  ;;  %v1878_v37 = vsel %vm1037_vm1, %v1876_v22, %v1877_v24  ;;  %v2374_v7 = vor.u32 %v2373_v3, %v2369_v59 }
  0x51   : > { %1910 = vrot.lane.b32.xlu1 %v1869_v29, %s5158_s26  ;;  %v713_v29 = vshrl.u32 %v4866_v25, 16 }
  0x52   : > { %v711_v26 = vsel %vm603_vm0, %v706_v15, %v710_v16  ;;  %v744_v15 = vshll.u32 %v4881_v11, 16  ;;  %v4887_v16 = vld [vmem:[%s5262_s19 + $0x80] ss:$0 sps:$4 sm:$0x11]   ;;  %v2379_v19 = vsel %vm603_vm0, %v2374_v7, %v2378_v5 }
  0x53   : > { %v4907_v5 = vld [vmem:[%s5262_s19 + $0x98] ss:$0 sps:$4 sm:$0x11]   ;;  %v4909_v11 = vld [vmem:[%s5262_s19 + $0x8c] ss:$0 sps:$4 sm:$0x11]  }
  0x54   : > { %1236 = vrot.lane.b32.xlu0 %v4844_v30, %s5158_s26  ;;  %v715_v30 = vshll.u32 %v4866_v25, 16  ;;  %v746_v24 = vrot.slane %v744_v15, 1  ;;  %v2385_v25 = vrot.slane %v2383_v18, 1  ;;  %v4911_v15 = vld [vmem:[%s5262_s19 + $0x90] sm:$0xff]  }
  0x55   : > { %808 = vrot.lane.b32.xlu1 %v687_v42, %s5158_s26  ;;  %v4873_v42 = vld [vmem:[%s5262_s19 + $0x78] sm:$0xff]   ;;  %423 = vst.msk [vmem:[#allocation2 + $0x1e0] sm:$0xff] %vm410_vm2, %v4911_v15 }
  0x56   : > { %v717_v35 = vrot.slane %v715_v30, 1  ;;  %v725_v48 = vshrl.u32 %v4873_v42, 16  ;;  %v4889_v30 = vld [vmem:[%s5262_s19 + $0x74] ss:$0 sps:$4 sm:$0x11]  }
  0x57   : > { %v1886_v36 = vrot.slane %v4889_v30, 1 }
  0x58   : > { %2458 = vrot.lane.b32.xlu0 %v2331_v50, %s5158_s26  ;;  %v718_v43 = vor.u32 %v717_v35, %v713_v29  ;;  %v1879_v50 = vrot.slane %v4870_v44, 1  ;;  %v4888_v29 = vld [vmem:[%s5262_s19 + $0x6c] sm:$0xfe]  }
  0x59   : > { %1912 = vrot.lane.b32.xlu1 %v1872_v53, %s5158_s26  ;;  %v4874_v53 = vld [vmem:[%s5262_s19 + $0x80] ss:$0 sps:$4 sm:$0x11]   ;;  %v1885_v35 = vrot.slane %v4888_v29, 1 }
  0x5a   : > { %v723_v52 = vsel %vm603_vm0, %v718_v43, %v722_v39  ;;  %v732_v56 = vshll.u32 %v4874_v53, 16  ;;  %v1881_v61 = vsel %vm1037_vm1, %v1879_v50, %v1880_v51  ;;  %v2395_v39 = vshll.u32 %v4894_v31, 16  ;;  %v4900_v43 = vld [vmem:[%s6235_s2 + $0x68] sm:$0xff]   ;;  %v4919_v29 = vld [vmem:[%s5262_s19 + $0xa4] ss:$0 sps:$4 sm:$0x11]  }
  0x5b   : > { %4730 = vmatprep.subr.bf16.mxu1 %v4900_v43  ;;  %v2402_v50 = vrot.slane %v2400_v45, 1  ;;  %v1888_v51 = vrot.slane %v4896_v46, 1  ;;  %v4903_v53 = vld [vmem:[%s6235_s2 + $0x28] sm:$0xff]   ;;  %4451 = vmatprep.subr.bf16.mxu0 %v4900_v43  ;;  %v4922_v43 = vld [vmem:[%s5262_s19 + $0x98] ss:$0 sps:$4 sm:$0x11]  }
  0x5c   : > { %1238 = vrot.lane.b32.xlu0 %v4851_v54, %s5158_s26  ;;  %v727_v54 = vshll.u32 %v4873_v42, 16  ;;  %v734_v0 = vrot.slane %v732_v56, 1  ;;  %v2397_v42 = vrot.slane %v2395_v39, 1  ;;  %4738 = vmatpush3.bf16.msra.mxu1 %v4903_v53  ;;  %v1895_v46 = vrot.slane %v4922_v43, 1 }
  0x5d   : > { %810 = vrot.lane.b32.xlu1 %v699_v4, %s5158_s26  ;;  %v4878_v4 = vld [vmem:[%s5262_s19 + $0x68] ss:$0 sps:$4 sm:$0x11]   ;;  %4452 = vmatpush3.bf16.msra.mxu0 %v4903_v53 }
  0x5e   : > { %v729_v55 = vrot.slane %v727_v54, 1  ;;  %v1883_v8 = vrot.slane %v4878_v4, 1  ;;  %4731 = vmatprep.subr.bf16.mxu1 %v4910_v60  ;;  %4453 = vmatprep.subr.bf16.mxu0 %v4910_v60 }
  0x60   : > { %2460 = vrot.lane.b32.xlu0 %v2343_v10, %s5158_s26  ;;  %v730_v63 = vor.u32 %v729_v55, %v725_v48  ;;  %v1884_v22 = vsel %vm1037_vm1, %v1882_v6, %v1883_v8  ;;  %v1887_v48 = vsel %vm1037_vm1, %v1885_v35, %v1886_v36  ;;  %v4901_v55 = vld [vmem:[%s5262_s19 + $0x90] sm:$0xfe]   ;;  %v2424_v35 = vshll.u32 %v4919_v29, 16  ;;  %v4923_v36 = vld [vmem:[%s6235_s2 + $0xc0] sm:$0xff]  }
  0x61   : > { %1914 = vrot.lane.b32.xlu1 %v1875_v13, %s5158_s26  ;;  %v737_v13 = vshrl.u32 %v4880_v9, 16  ;;  %v1074_v59 = vrot.slane %v4901_v55, 1 }
  0x62   : > { %v735_v10 = vsel %vm603_vm0, %v730_v63, %v734_v0  ;;  %v4904_v63 = vld [vmem:[%s5262_s19] sm:$0xfe]   ;;  %v4905_v0 = vld [vmem:[%s5262_s19 + $0x8] ss:$0 sps:$4 sm:$0x11]   ;;  %v2426_v41 = vrot.slane %v2424_v35, 1 }
  0x63   : > { %v1038_v3 = vrot.slane %v4904_v63, 1  ;;  %v1039_v4 = vrot.slane %v4905_v0, 1  ;;  %v4929_v63 = vld [vmem:[%s5262_s19 + $0xa8] sm:$0xfe]  }
  0x64   : > { %1240 = vrot.lane.b32.xlu0 %v4858_v14, %s5158_s26  ;;  %v739_v14 = vshll.u32 %v4880_v9, 16  ;;  %v2412_v9 = vshll.u32 %v4907_v5, 16  ;;  %v4930_v0 = vld [vmem:[%s5262_s19 + $0xb0] ss:$0 sps:$4 sm:$0x11]   ;;  %v4932_v5 = vld [vmem:[%s5262_s19 + $0xa8] sm:$0xff]  }
  0x65   : > { %812 = vrot.lane.b32.xlu1 %v711_v26, %s5158_s26  ;;  %v2388_v26 = vshll.u32 %v4887_v16, 16  ;;  %v1040_v7 = vsel %vm1037_vm1, %v1038_v3, %v1039_v4  ;;  %v1081_v3 = vrot.slane %v4930_v0, 1 }
  0x66   : > { %v741_v20 = vrot.slane %v739_v14, 1  ;;  %1102 = vst.msk [vmem:[#allocation2 + $0x8] sm:$0xff] %vm410_vm2, %v1040_v7  ;;  %v2414_v12 = vrot.slane %v2412_v9, 1  ;;  %v1892_v14 = vrot.slane %v4909_v11, 1  ;;  %v4934_v9 = vld [vmem:[%s5262_s19 + $0xa8] sm:$0xff]   ;;  %v2431_v11 = vshll.u32 %v4932_v5, 16 }
  0x67   : > { %v2390_v32 = vrot.slane %v2388_v26, 1  ;;  %425 = vst.msk [vmem:[#allocation2 + $0x230] sm:$0xff] %vm410_vm2, %v4934_v9 }
  0x68   : > { %2462 = vrot.lane.b32.xlu0 %v2355_v34, %s5158_s26  ;;  %v742_v28 = vor.u32 %v741_v20, %v737_v13  ;;  %v2386_v34 = vor.u32 %v2385_v25, %v2381_v17  ;;  %v4912_v17 = vld [vmem:[%s6235_s2 + $0x30] sm:$0xff]   ;;  %v4917_v25 = vld [vmem:[%s6235_s2 + $0x38] sm:$0xff]  }
  0x69   : > { %1916 = vrot.lane.b32.xlu1 %v1878_v37, %s5158_s26  ;;  %4739 = vmatpush3.bf16.msra.mxu1 %v4912_v17 }
  0x6a   : > { %v747_v37 = vsel %vm603_vm0, %v742_v28, %v746_v24  ;;  %v2391_v44 = vsel %vm603_vm0, %v2386_v34, %v2390_v32  ;;  %4454 = vmatpush3.bf16.msra.mxu0 %v4912_v17  ;;  %v4916_v24 = vld [vmem:[%s5262_s19 + $0xa4] ss:$0 sps:$4 sm:$0x11]   ;;  %v2419_v32 = vshll.u32 %v4918_v27, 16 }
  0x6b   : > { %v1078_v28 = vrot.slane %v4916_v24, 1 }
  0x6c   : > { %1242 = vrot.lane.b32.xlu0 %v4865_v38, %s5158_s26  ;;  %v2393_v38 = vshrl.u32 %v4894_v31, 16  ;;  %v2417_v31 = vshrl.u32 %v4918_v27, 16 }
  0x6d   : > { %814 = vrot.lane.b32.xlu1 %v723_v52, %s5158_s26  ;;  %v1889_v52 = vrot.slane %v4897_v47, 1 }
  0x6e   : > { %v2398_v49 = vor.u32 %v2397_v42, %v2393_v38  ;;  %v2421_v38 = vrot.slane %v2419_v32, 1  ;;  %v4921_v42 = vld [vmem:[%s5262_s19 + $0x90] sm:$0xfe]   ;;  %v4941_v32 = vld [vmem:[%s5262_s19 + $0x18] sm:$0xff]  }
  0x6f   : > { %v1890_v56 = vsel %vm1037_vm1, %v1888_v51, %v1889_v52  ;;  %v1894_v45 = vrot.slane %v4921_v42, 1  ;;  %v4926_v51 = vld [vmem:[%s5262_s19 + $0xc] sm:$0xff]   ;;  %413 = vst.msk [vmem:[#allocation2 + $0x50] sm:$0xff] %vm410_vm2, %v4941_v32  ;;  %v4945_v42 = vld [vmem:[%s6235_s2 + $0xd8] sm:$0xff]  }
  0x70   : > { %2464 = vrot.lane.b32.xlu0 %v2367_v58, %s5158_s26  ;;  %v2403_v54 = vsel %vm603_vm0, %v2398_v49, %v2402_v50  ;;  %v4906_v58 = vld [vmem:[%s5262_s19 + $0x90] sm:$0xff]   ;;  %412 = vst.msk [vmem:[#allocation2 + $0x28] sm:$0xff] %vm410_vm2, %v4926_v51  ;;  %v4949_v51 = vld [vmem:[%s6235_s2 + $0x98] sm:$0xff]  }
  0x71   : > { %1918 = vrot.lane.b32.xlu1 %v1881_v61, %s5158_s26  ;;  %v1075_v61 = vrot.slane %v4902_v57, 1  ;;  %v2407_v1 = vshll.u32 %v4906_v58, 16  ;;  %v4924_v49 = vld [vmem:[%s5262_s19 + $0xc] sm:$0xfe]   ;;  %v1896_v53 = vsel %vm1037_vm1, %v1894_v45, %v1895_v46  ;;  %v4928_v57 = vld [vmem:[%s6235_s2 + $0x100] sm:$0xff]   ;;  %v4946_v45 = vld [vmem:[%s5262_s19 + $0xb4] sm:$0xff]  }
  0x72   : > { %v4925_v50 = vld [vmem:[%s5262_s19 + $0x14] ss:$0 sps:$4 sm:$0x11]  }
  0x73   : > { %v1076_v2 = vsel %vm1037_vm1, %v1074_v59, %v1075_v61  ;;  %v2409_v6 = vrot.slane %v2407_v1, 1  ;;  %v1042_v55 = vrot.slane %v4925_v50, 1  ;;  %v4931_v1 = vld [vmem:[%s6235_s2 + $0xc8] sm:$0xff]   ;;  %v2443_v50 = vshll.u32 %v4946_v45, 16 }
  0x74   : > { %1244 = vrot.lane.b32.xlu0 %v4872_v62, %s5158_s26  ;;  %v2405_v62 = vshrl.u32 %v4906_v58, 16  ;;  %1114 = vst.msk [vmem:[#allocation2 + $0x1e8] sm:$0xff] %vm410_vm2, %v1076_v2  ;;  %v1080_v2 = vrot.slane %v4929_v63, 1 }
  0x75   : > { %816 = vrot.lane.b32.xlu1 %v735_v10, %s5158_s26  ;;  %v4908_v10 = vld [vmem:[%s5262_s19 + $0x84] sm:$0xfe]  }
  0x76   : > { %v2410_v8 = vor.u32 %v2409_v6, %v2405_v62  ;;  %v1891_v13 = vrot.slane %v4908_v10, 1  ;;  %v4933_v6 = vld [vmem:[%s5262_s19 + $0xb0] ss:$0 sps:$4 sm:$0x11]   ;;  %v1082_v7 = vsel %vm1037_vm1, %v1080_v2, %v1081_v3  ;;  %v2429_v10 = vshrl.u32 %v4932_v5, 16  ;;  %v4954_v5 = vld [vmem:[%s6235_s2 + $0xe0] sm:$0xff]  }
  0x77   : > { %1116 = vst.msk [vmem:[#allocation2 + $0x238] sm:$0xff] %vm410_vm2, %v1082_v7  ;;  %v4952_v3 = vld [vmem:[%s5262_s19 + $0x24] sm:$0xfe]  }
  0x78   : > { %2466 = vrot.lane.b32.xlu0 %v2379_v19, %s5158_s26  ;;  %v2415_v19 = vsel %vm603_vm0, %v2410_v8, %v2414_v12  ;;  %v1893_v20 = vsel %vm1037_vm1, %v1891_v13, %v1892_v14  ;;  %v2436_v12 = vshll.u32 %v4933_v6, 16  ;;  %v4935_v13 = vld [vmem:[%s6235_s2 + $0x88] sm:$0xff]   ;;  %v2433_v14 = vrot.slane %v2431_v11, 1 }
  0x79   : > { %1920 = vrot.lane.b32.xlu1 %v1884_v22, %s5158_s26  ;;  %v4914_v22 = vld [vmem:[%s6235_s2 + $0x78] sm:$0xff]   ;;  %v1047_v7 = vrot.slane %v4952_v3, 1  ;;  %v4975_v3 = vld [vmem:[%s5302_s30 + $0x14] ss:$0 sps:$4 sm:$0x11]  }
  0x7a   : > { %4732 = vmatprep.subr.bf16.mxu1 %v4914_v22  ;;  %4455 = vmatprep.subr.bf16.mxu0 %v4914_v22  ;;  %v2438_v15 = vrot.slane %v2436_v12, 1  ;;  %v2434_v21 = vor.u32 %v2433_v14, %v2429_v10  ;;  %v4955_v10 = vld [vmem:[%s5262_s19 + $0x24] sm:$0xff]  }
  0x7b   : > { %4740 = vmatpush3.bf16.msra.mxu1 %v4917_v25  ;;  %4456 = vmatpush3.bf16.msra.mxu0 %v4917_v25  ;;  %v4938_v25 = vld [vmem:[%s5262_s19 + $0x18] sm:$0xfe]   ;;  %414 = vst.msk [vmem:[#allocation2 + $0x78] sm:$0xff] %vm410_vm2, %v4955_v10 }
  0x7c   : > { %1246 = vrot.lane.b32.xlu0 %v4879_v23, %s5158_s26  ;;  %v4915_v23 = vld [vmem:[%s5262_s19 + $0x9c] sm:$0xfe]   ;;  %4553 = vmatprep.subr.bf16.mxu1 %v4923_v36  ;;  %v2439_v27 = vsel %vm603_vm0, %v2434_v21, %v2438_v15 }
  0x7d   : > { %818 = vrot.lane.b32.xlu1 %v747_v37, %s5158_s26  ;;  %v1077_v26 = vrot.slane %v4915_v23, 1  ;;  %4685 = vmatprep.subr.bf16.mxu0 %v4928_v57  ;;  %v4940_v23 = vld [vmem:[%s6235_s2 + $0xd0] sm:$0xff]   ;;  %v4956_v15 = vld [vmem:[%s6235_s2 + $0xa0] sm:$0xff]  }
  0x7e   : > { %v4959_v21 = vld [vmem:[%s5302_s30] sm:$0xff]  }
  0x7f   : > { %v1079_v34 = vsel %vm1037_vm1, %v1077_v26, %v1078_v28  ;;  %v4939_v26 = vld [vmem:[%s5262_s19 + $0x20] ss:$0 sps:$4 sm:$0x11]  }
  0x80   : > { %2468 = vrot.lane.b32.xlu0 %v2391_v44, %s5158_s26  ;;  %1115 = vst.msk [vmem:[#allocation2 + $0x210] sm:$0xff] %vm410_vm2, %v1079_v34  ;;  %v2422_v44 = vor.u32 %v2421_v38, %v2417_v31  ;;  %v1045_v31 = vrot.slane %v4939_v26, 1  ;;  %v4961_v26 = vld [vmem:[%s5262_s19 + $0xc] sm:$0xff]  }
  0x81   : > { %1922 = vrot.lane.b32.xlu1 %v1887_v48, %s5158_s26  ;;  %v1462_v32 = vshrl.u32 %v4961_v26, 16 }
  0x82   : > { %v2427_v48 = vsel %vm603_vm0, %v2422_v44, %v2426_v41  ;;  %v4944_v41 = vld [vmem:[%s5262_s19 + $0xbc] ss:$0 sps:$4 sm:$0x11]  }
  0x83   : > { %v1084_v46 = vrot.slane %v4944_v41, 1 }
  0x84   : > { %2470 = vrot.lane.b32.xlu0 %v2403_v54, %s5158_s26  ;;  %v1041_v54 = vrot.slane %v4924_v49, 1  ;;  %v2441_v49 = vshrl.u32 %v4946_v45, 16 }
  0x85   : > { %1924 = vrot.lane.b32.xlu1 %v1890_v56, %s5158_s26  ;;  %v4927_v56 = vld [vmem:[%s6235_s2 + $0x80] sm:$0xff]  }
  0x86   : > { %v1043_v58 = vsel %vm1037_vm1, %v1041_v54, %v1042_v55  ;;  %v2445_v55 = vrot.slane %v2443_v50, 1 }
  0x87   : > { %1103 = vst.msk [vmem:[#allocation2 + $0x30] sm:$0xff] %vm410_vm2, %v1043_v58 }
  0x88   : > { %2472 = vrot.lane.b32.xlu0 %v2415_v19, %s5158_s26  ;;  %v2446_v58 = vor.u32 %v2445_v55, %v2441_v49  ;;  %v4969_v49 = vld [vmem:[%s5262_s19 + $0x30] sm:$0xff]  }
  0x89   : > { %1926 = vrot.lane.b32.xlu1 %v1893_v20, %s5158_s26  ;;  %415 = vst.msk [vmem:[#allocation2 + $0xa0] sm:$0xff] %vm410_vm2, %v4969_v49 }
  0x8c   : > { %2474 = vrot.lane.b32.xlu0 %v2427_v48, %s5158_s26  ;;  %v4947_v48 = vld [vmem:[%s5262_s19 + $0xbc] ss:$0 sps:$4 sm:$0x11]  }
  0x8d   : > { %1928 = vrot.lane.b32.xlu1 %v1896_v53, %s5158_s26 }
  0x8e   : > { %v1249_v16 = vpop.permute.xlu0 %1248  ;;  %v1225_v18 = vpop.permute.xlu1 %1224 }
  0x8f   : > { %1281 = vst.msk [vmem:[#allocation2 + $0x1e8] sm:$0xff] %vm844_vm3, %v1249_v16  ;;  %1269 = vst.msk [vmem:[#allocation2 + $0x8] sm:$0xff] %vm844_vm3, %v1225_v18  ;;  %v4936_v16 = vld [vmem:[%s5262_s19 + $0x9c] sm:$0xfe]  }
  0x90   : > { %v4937_v18 = vld [vmem:[%s5262_s19 + $0xa4] ss:$0 sps:$4 sm:$0x11]   ;;  %v1897_v22 = vrot.slane %v4936_v16, 1  ;;  %2476 = vrot.lane.b32.xlu0 %v2439_v27, %s5158_s26 }
  0x91   : > { %v1898_v24 = vrot.slane %v4937_v18, 1  ;;  %v4962_v27 = vld [vmem:[%s5262_s19 + $0x14] ss:$0 sps:$4 sm:$0x11]  }
  0x93   : > { %v1899_v29 = vsel %vm1037_vm1, %v1897_v22, %v1898_v24  ;;  %v4960_v22 = vld [vmem:[%s5302_s30 + $0x8] ss:$0 sps:$4 sm:$0x11]   ;;  %v2533_v24 = vshll.u32 %v4959_v21, 16 }
  0x94   : > { %1930 = vrot.lane.b32.xlu1 %v1899_v29, %s5158_s26 }
  0x96   : > { %v2879_v30 = vld [vmem:[#allocation2 + $0x1e8] sm:$0xff]  ;;  %v821_v37 = vpop.permute.xlu0 %820 }
  0x97   : > { %3362 = vmatprep.mubr.bf16.mxu1 %v2879_v30  ;;  %v2819_v39 = vld [vmem:[#allocation2 + $0x8] sm:$0xff]  ;;  %857 = vst.msk [vmem:[#allocation2 + $0x1e0] sm:$0xff] %vm844_vm3, %v821_v37  ;;  %v797_v40 = vpop.permute.xlu1 %796  ;;  %v1044_v30 = vrot.slane %v4938_v25, 1  ;;  %v4942_v37 = vld [vmem:[%s6235_s2 + $0x90] sm:$0xff]   ;;  %v2538_v25 = vshll.u32 %v4960_v22, 16 }
  0x98   : > { %3266 = vmatprep.mubr.bf16.mxu0 %v2819_v39  ;;  %845 = vst.msk [vmem:[#allocation2] sm:$0xff] %vm844_vm3, %v797_v40  ;;  %v4943_v39 = vld [vmem:[%s5262_s19 + $0xb4] sm:$0xfe]  }
  0x99   : > { %v1046_v36 = vsel %vm1037_vm1, %v1044_v30, %v1045_v31  ;;  %v1083_v44 = vrot.slane %v4943_v39, 1  ;;  %v2535_v30 = vrot.slane %v2533_v24, 1  ;;  %v2540_v31 = vrot.slane %v2538_v25, 1  ;;  %v4964_v39 = vld [vmem:[%s5262_s19 + $0xb4] sm:$0xfe]  }
  0x9a   : > { %v1251_v47 = vpop.permute.xlu0 %1250  ;;  %1104 = vst.msk [vmem:[#allocation2 + $0x58] sm:$0xff] %vm410_vm2, %v1046_v36  ;;  %v1903_v45 = vrot.slane %v4964_v39, 1  ;;  %v4980_v24 = vld [vmem:[%s5302_s30 + $0x8] ss:$0 sps:$4 sm:$0x11]  }
  0x9b   : > { %1282 = vst.msk [vmem:[#allocation2 + $0x210] sm:$0xff] %vm844_vm3, %v1251_v47  ;;  %v823_v52 = vpop.permute.xlu1 %822  ;;  %v4948_v47 = vld [vmem:[%s5262_s19 + $0xb4] sm:$0xff]   ;;  %v1085_v53 = vsel %vm1037_vm1, %v1083_v44, %v1084_v46 }
  0x9c   : > { %858 = vst.msk [vmem:[#allocation2 + $0x208] sm:$0xff] %vm844_vm3, %v823_v52 }
  0x9d   : > { %426 = vst.msk [vmem:[#allocation2 + $0x258] sm:$0xff] %vm410_vm2, %v4948_v47  ;;  %1117 = vst.msk [vmem:[#allocation2 + $0x260] sm:$0xff] %vm410_vm2, %v1085_v53  ;;  %v4966_v47 = vld [vmem:[%s5262_s19 + $0x30] sm:$0xfe]  }
  0x9e   : > { %v1227_v59 = vpop.permute.xlu0 %1226  ;;  %v2878_v60 = vld [vmem:[#allocation2 + $0x1e0] sm:$0xff]  ;;  %v1050_v53 = vrot.slane %v4966_v47, 1  ;;  %v4987_v47 = vld [vmem:[%s5262_s19 + $0x48] sm:$0xfe]  }
  0x9f   : > { %v799_v61 = vpop.permute.xlu1 %798  ;;  %3363 = vmatmul.mubr.bf16.vlgmr.msra.gmra.mrb[0].mxu1 %v2878_v60  ;;  %v2818_v62 = vld [vmem:[#allocation2] sm:$0xff]  ;;  %1270 = vst.msk [vmem:[#allocation2 + $0x30] sm:$0xff] %vm844_vm3, %v1227_v59  ;;  %v4951_v60 = vld [vmem:[%s5262_s19 + $0xb0] ss:$0 sps:$4 sm:$0x11]  }
  0xa0   : > { %846 = vst.msk [vmem:[#allocation2 + $0x28] sm:$0xff] %vm844_vm3, %v799_v61  ;;  %4554 = vmatpush3.bf16.msra.mxu1 %v4927_v56  ;;  %3267 = vmatmul.mubr.bf16.vlgmr.msra.gmra.mrb[0].mxu0 %v2818_v62  ;;  %v2448_v56 = vshll.u32 %v4947_v48, 16  ;;  %v1901_v2 = vrot.slane %v4951_v60, 1  ;;  %v4967_v48 = vld [vmem:[%s5262_s19 + $0x38] ss:$0 sps:$4 sm:$0x11]  }
  0xa1   : > { %4686 = vmatpush3.bf16.msra.mxu0 %v4928_v57  ;;  %4555 = vmatprep.subr.bf16.mxu1 %v4931_v1  ;;  %v4950_v57 = vld [vmem:[%s5262_s19 + $0xa8] sm:$0xfe]  }
  0xa2   : > { %v1253_v4 = vpop.permute.xlu0 %1252  ;;  %v2884_v19 = vld [vmem:[#allocation2 + $0x210] sm:$0xff]  ;;  %v2450_v59 = vrot.slane %v2448_v56, 1  ;;  %v1900_v62 = vrot.slane %v4950_v57, 1  ;;  %v1051_v56 = vrot.slane %v4967_v48, 1 }
  0xa3   : > { %v825_v8 = vpop.permute.xlu1 %824  ;;  %1283 = vst.msk [vmem:[#allocation2 + $0x238] sm:$0xff] %vm844_vm3, %v1253_v4  ;;  %3370 = vmatprep.mubr.bf16.mxu1 %v2884_v19  ;;  %v2883_v35 = vld [vmem:[#allocation2 + $0x208] sm:$0xff] }
  0xa4   : > { %859 = vst.msk [vmem:[#allocation2 + $0x230] sm:$0xff] %vm844_vm3, %v825_v8  ;;  %4556 = vmatpush3.bf16.msra.mxu1 %v4935_v13  ;;  %v2451_v1 = vsel %vm603_vm0, %v2446_v58, %v2450_v59  ;;  %v4953_v4 = vld [vmem:[%s5262_s19 + $0x2c] ss:$0 sps:$4 sm:$0x11]   ;;  %v1902_v6 = vsel %vm1037_vm1, %v1900_v62, %v1901_v2  ;;  %v4970_v59 = vld [vmem:[%s6235_s2 + $0xb0] sm:$0xff]   ;;  %v1052_v62 = vsel %vm1037_vm1, %v1050_v53, %v1051_v56 }
  0xa5   : > { %4557 = vmatprep.subr.bf16.mxu1 %v4940_v23  ;;  %2478 = vrot.lane.b32.xlu0 %v2451_v1, %s5158_s26  ;;  %v1048_v8 = vrot.slane %v4953_v4, 1  ;;  %v4958_v19 = vld [vmem:[%s6235_s2 + $0xe8] sm:$0xff]   ;;  %v2531_v23 = vshrl.u32 %v4959_v21, 16  ;;  %1106 = vst.msk [vmem:[#allocation2 + $0xa8] sm:$0xff] %vm410_vm2, %v1052_v62  ;;  %v4990_v62 = vld [vmem:[%s5262_s19 + $0x3c] sm:$0xff]  }
  0xa6   : > { %v1229_v17 = vpop.permute.xlu0 %1228  ;;  %v2824_v33 = vld [vmem:[#allocation2 + $0x30] sm:$0xff]  ;;  %1932 = vrot.lane.b32.xlu1 %v1902_v6, %s5158_s26  ;;  %2100 = vst.msk [vmem:[#allocation2 + $0x90] sm:$0xff] %vm410_vm2, %v4990_v62 }
  0xa7   : > { %v801_v20 = vpop.permute.xlu1 %800  ;;  %3274 = vmatprep.mubr.bf16.mxu0 %v2824_v33  ;;  %3371 = vmatmul.mubr.bf16.gmra.mrb[4].mxu1 %v2883_v35  ;;  %v2823_v38 = vld [vmem:[#allocation2 + $0x28] sm:$0xff]  ;;  %1271 = vst.msk [vmem:[#allocation2 + $0x58] sm:$0xff] %vm844_vm3, %v1229_v17  ;;  %v1049_v14 = vsel %vm1037_vm1, %v1047_v7, %v1048_v8  ;;  %v4957_v17 = vld [vmem:[%s5262_s19 + $0x18] sm:$0xff]   ;;  %v1464_v33 = vshll.u32 %v4961_v26, 16  ;;  %v2550_v7 = vshll.u32 %v4975_v3, 16 }
  0xa8   : > { %847 = vst.msk [vmem:[#allocation2 + $0x50] sm:$0xff] %vm844_vm3, %v801_v20  ;;  %3275 = vmatmul.mubr.bf16.gmra.mrb[4].mxu0 %v2823_v38  ;;  %4558 = vmatpush3.bf16.msra.mxu1 %v4942_v37  ;;  %v2536_v37 = vor.u32 %v2535_v30, %v2531_v23  ;;  %v4974_v2 = vld [vmem:[%s5302_s30 + $0xc] sm:$0xff]   ;;  %v4977_v8 = vld [vmem:[%s5262_s19 + $0x20] ss:$0 sps:$4 sm:$0x11]   ;;  %v1978_v30 = vrot.slane %v4980_v24, 1 }
  0xa9   : > { %4559 = vmatprep.subr.bf16.mxu1 %v4945_v42  ;;  %1105 = vst.msk [vmem:[#allocation2 + $0x80] sm:$0xff] %vm410_vm2, %v1049_v14  ;;  %2097 = vst.msk [vmem:[#allocation2 + $0x18] sm:$0xff] %vm410_vm2, %v4957_v17  ;;  %v1466_v38 = vrot.slane %v1464_v33, 1  ;;  %v4968_v42 = vld [vmem:[%s6235_s2 + $0xf0] sm:$0xff]   ;;  %v2545_v6 = vshll.u32 %v4974_v2, 16  ;;  %v2552_v14 = vrot.slane %v2550_v7, 1 }
  0xaa   : > { %v1292_v28 = vpop.permute.xlu0 %1291  ;;  %v2889_v63 = vld [vmem:[#allocation2 + $0x238] sm:$0xff]  ;;  %v4979_v23 = vld [vmem:[%s5302_s30] sm:$0xfe]  }
  0xab   : > { %v827_v34 = vpop.permute.xlu1 %826  ;;  %1295 = vst.msk [vmem:[#allocation2 + $0x260] sm:$0xff] %vm844_vm3, %v1292_v28  ;;  %3378 = vmatprep.mubr.bf16.mxu1 %v2889_v63  ;;  %v2888_v12 = vld [vmem:[#allocation2 + $0x230] sm:$0xff]  ;;  %v4963_v28 = vld [vmem:[%s6235_s2 + $0xa8] sm:$0xff]   ;;  %v1467_v44 = vor.u32 %v1466_v38, %v1462_v32  ;;  %v4982_v33 = vld [vmem:[%s5262_s19 + $0x44] ss:$0 sps:$4 sm:$0x11]  }
  0xac   : > { %860 = vst.msk [vmem:[#allocation2 + $0x258] sm:$0xff] %vm844_vm3, %v827_v34  ;;  %4560 = vmatpush3.bf16.msra.mxu1 %v4949_v51  ;;  %v1469_v34 = vshll.u32 %v4962_v27, 16  ;;  %v4971_v63 = vld [vmem:[%s5262_s19 + $0x24] sm:$0xff]   ;;  %v4992_v3 = vld [vmem:[%s5262_s19 + $0x38] ss:$0 sps:$4 sm:$0x11]  }
  0xad   : > { %4561 = vmatprep.subr.bf16.mxu1 %v4954_v5  ;;  %2098 = vst.msk [vmem:[#allocation2 + $0x40] sm:$0xff] %vm410_vm2, %v4971_v63  ;;  %v4976_v5 = vld [vmem:[%s5262_s19 + $0x18] sm:$0xff]   ;;  %v1505_v7 = vshll.u32 %v4992_v3, 16 }
  0xae   : > { %v1231_v40 = vpop.permute.xlu0 %1230  ;;  %v2829_v11 = vld [vmem:[#allocation2 + $0x58] sm:$0xff]  ;;  %v1471_v41 = vrot.slane %v1469_v34, 1  ;;  %v1474_v10 = vshrl.u32 %v4976_v5, 16 }
  0xaf   : > { %v803_v43 = vpop.permute.xlu1 %802  ;;  %3282 = vmatprep.mubr.bf16.mxu0 %v2829_v11  ;;  %3379 = vmatmul.mubr.bf16.gmra.mrb[8].mxu1 %v2888_v12  ;;  %v2828_v16 = vld [vmem:[#allocation2 + $0x50] sm:$0xff]  ;;  %1272 = vst.msk [vmem:[#allocation2 + $0x80] sm:$0xff] %vm844_vm3, %v1231_v40  ;;  %v4965_v40 = vld [vmem:[%s5262_s19 + $0xbc] ss:$0 sps:$4 sm:$0x11]   ;;  %v1476_v11 = vshll.u32 %v4976_v5, 16 }
  0xb0   : > { %848 = vst.msk [vmem:[#allocation2 + $0x78] sm:$0xff] %vm844_vm3, %v803_v43  ;;  %4562 = vmatpush3.bf16.msra.mxu1 %v4956_v15  ;;  %3283 = vmatmul.mubr.bf16.gmra.mrb[8].mxu0 %v2828_v16  ;;  %v2541_v43 = vsel %vm603_vm0, %v2536_v37, %v2540_v31  ;;  %v1904_v46 = vrot.slane %v4965_v40, 1  ;;  %v1472_v51 = vsel %vm603_vm0, %v1467_v44, %v1471_v41  ;;  %v2547_v12 = vrot.slane %v2545_v6, 1  ;;  %v4981_v31 = vld [vmem:[%s5262_s19 + $0x3c] sm:$0xfe]  }
  0xb1   : > { %4563 = vmatprep.subr.bf16.mxu1 %v4958_v19  ;;  %2554 = vrot.lane.b32.xlu0 %v2541_v43, %s5158_s26  ;;  %1656 = vst.msk [vmem:[#allocation2 + $0x10] sm:$0xff] %vm410_vm2, %v1472_v51  ;;  %v1481_v15 = vshll.u32 %v4977_v8, 16  ;;  %v1478_v17 = vrot.slane %v1476_v11, 1  ;;  %v4983_v34 = vld [vmem:[%s5262_s19 + $0x3c] sm:$0xff]   ;;  %v1053_v37 = vrot.slane %v4981_v31, 1  ;;  %v4984_v43 = vld [vmem:[%s5262_s19 + $0x30] sm:$0xff]  }
  0xb2   : > { %v2453_v52 = vpop.permute.xlu0 %2452  ;;  %v2894_v35 = vld [vmem:[#allocation2 + $0x260] sm:$0xff]  ;;  %416 = vst.msk [vmem:[#allocation2 + $0xc8] sm:$0xff] %vm410_vm2, %v4983_v34  ;;  %2099 = vst.msk [vmem:[#allocation2 + $0x68] sm:$0xff] %vm410_vm2, %v4984_v43  ;;  %v4988_v51 = vld [vmem:[%s5262_s19 + $0x50] ss:$0 sps:$4 sm:$0x11]  }
  0xb3   : > { %v5589_v54 = vpop.permute.xlu1 %1906  ;;  %2494 = vst.msk [vmem:[#allocation2 + $0x18] sm:$0xff] %vm844_vm3, %v2453_v52  ;;  %3386 = vmatprep.mubr.bf16.mxu1 %v2894_v35  ;;  %v1905_v52 = vsel %vm1037_vm1, %v1903_v45, %v1904_v46  ;;  %v2893_v57 = vld [vmem:[#allocation2 + $0x258] sm:$0xff]  ;;  %v1483_v22 = vrot.slane %v1481_v15, 1  ;;  %v1479_v26 = vor.u32 %v1478_v17, %v1474_v10  ;;  %v4986_v46 = vld [vmem:[%s5262_s19 + $0x2c] ss:$0 sps:$4 sm:$0x11]  }
  0xb4   : > { %4564 = vmatpush3.bf16.msra.mxu1 %v4963_v28  ;;  %1934 = vrot.lane.b32.xlu1 %v1905_v52, %s5158_s26  ;;  %1951 = vst.msk [vmem:[#allocation2 + $0x10] sm:$0xff] %vm844_vm3, %v5589_v54  ;;  %v4972_v54 = vld [vmem:[%s6235_s2 + $0xf8] sm:$0xff]   ;;  %v1977_v28 = vrot.slane %v4979_v23, 1  ;;  %v1493_v49 = vshll.u32 %v4986_v46, 16  ;;  %v1056_v52 = vrot.slane %v4987_v47, 1  ;;  %v5002_v34 = vld [vmem:[%s5262_s19 + $0x60] sm:$0xff]  }
  0xb5   : > { %4565 = vmatprep.subr.bf16.mxu1 %v4968_v42  ;;  %v1484_v32 = vsel %vm603_vm0, %v1479_v26, %v1483_v22  ;;  %v1054_v42 = vrot.slane %v4982_v33, 1  ;;  %v4993_v8 = vld [vmem:[%s5262_s19 + $0x54] sm:$0xfe]   ;;  %v4994_v11 = vld [vmem:[%s5262_s19 + $0x5c] ss:$0 sps:$4 sm:$0x11]  }
  0xb6   : > { %v5596_v61 = vpop.permute.xlu0 %1232  ;;  %v2834_v55 = vld [vmem:[#allocation2 + $0x80] sm:$0xff]  ;;  %1657 = vst.msk [vmem:[#allocation2 + $0x38] sm:$0xff] %vm410_vm2, %v1484_v32  ;;  %v1979_v35 = vsel %vm1037_vm1, %v1977_v28, %v1978_v30  ;;  %v4995_v15 = vld [vmem:[%s5262_s19 + $0x54] sm:$0xff]   ;;  %v1060_v17 = vrot.slane %v4994_v11, 1  ;;  %419 = vst.msk [vmem:[#allocation2 + $0x140] sm:$0xff] %vm410_vm2, %v5002_v34 }
  0xb7   : > { %v5598_v0 = vpop.permute.xlu1 %804  ;;  %3290 = vmatprep.mubr.bf16.mxu0 %v2834_v55  ;;  %3387 = vmatmul.mubr.bf16.gmra.mrb[12].mxu1 %v2893_v57  ;;  %v2833_v60 = vld [vmem:[#allocation2 + $0x78] sm:$0xff]  ;;  %1273 = vst.msk [vmem:[#allocation2 + $0xa8] sm:$0xff] %vm844_vm3, %v5596_v61  ;;  %v2543_v61 = vshrl.u32 %v4974_v2, 16  ;;  %v1055_v45 = vsel %vm1037_vm1, %v1053_v37, %v1054_v42  ;;  %v1495_v57 = vrot.slane %v1493_v49, 1  ;;  %v4991_v2 = vld [vmem:[%s5262_s19 + $0x30] sm:$0xff]   ;;  %v5004_v46 = vld [vmem:[%s5262_s19 + $0x48] sm:$0xff]  }
  0xb8   : > { %849 = vst.msk [vmem:[#allocation2 + $0xa0] sm:$0xff] %vm844_vm3, %v5598_v0  ;;  %3291 = vmatmul.mubr.bf16.gmra.mrb[12].mxu0 %v2833_v60  ;;  %4566 = vmatpush3.bf16.msra.mxu1 %v4970_v59  ;;  %v4973_v0 = vld [vmem:[%s6235_s2 + $0x108] sm:$0xff]   ;;  %v1057_v59 = vrot.slane %v4988_v51, 1  ;;  %v1498_v6 = vshrl.u32 %v4991_v2, 16 }
  0xb9   : > { %4567 = vmatprep.subr.bf16.mxu1 %v4972_v54  ;;  %4687 = vmatprep.subr.bf16.mxu0 %v4973_v0  ;;  %v2548_v21 = vor.u32 %v2547_v12, %v2543_v61  ;;  %1107 = vst.msk [vmem:[#allocation2 + $0xd0] sm:$0xff] %vm410_vm2, %v1055_v45  ;;  %418 = vst.msk [vmem:[#allocation2 + $0x118] sm:$0xff] %vm410_vm2, %v4995_v15  ;;  %v5005_v49 = vld [vmem:[%s5262_s19 + $0x50] ss:$0 sps:$4 sm:$0x11]  }
  0xba   : > { %v5608_v9 = vpop.permute.xlu0 %2454  ;;  %4688 = vmatpush3.bf16.msra.mxu0 %v4973_v0  ;;  %v2821_v19 = vld [vmem:[#allocation2 + $0x18] sm:$0xff]  ;;  %1980 = vrot.lane.b32.xlu1 %v1979_v35, %s5158_s26  ;;  %v1058_v54 = vsel %vm1037_vm1, %v1056_v52, %v1057_v59  ;;  %v1529_v59 = vshll.u32 %v5005_v49, 16 }
  0xbb   : > { %v5612_v13 = vpop.permute.xlu1 %1908  ;;  %2495 = vst.msk [vmem:[#allocation2 + $0x40] sm:$0xff] %vm844_vm3, %v5608_v9  ;;  %v4978_v9 = vld [vmem:[%s6235_s2 + $0xb8] sm:$0xff]   ;;  %3427 = vmatprep.mubr.bf16.mxu1 %v2821_v19  ;;  %v2553_v27 = vsel %vm603_vm0, %v2548_v21, %v2552_v14  ;;  %v2820_v39 = vld [vmem:[#allocation2 + $0x10] sm:$0xff]  ;;  %v1507_v14 = vrot.slane %v1505_v7, 1  ;;  %v4996_v19 = vld [vmem:[%s5262_s19 + $0x48] sm:$0xff]  }
  0xbc   : > { %4568 = vmatpush3.bf16.msra.mxu1 %v4978_v9  ;;  %2556 = vrot.lane.b32.xlu0 %v2553_v27, %s5158_s26  ;;  %1952 = vst.msk [vmem:[#allocation2 + $0x38] sm:$0xff] %vm844_vm3, %v5612_v13  ;;  %v4985_v13 = vld [vmem:[%s5262_s19 + $0x24] sm:$0xff]   ;;  %v4998_v27 = vld [vmem:[%s5262_s19 + $0x3c] sm:$0xff]  }
  0xbd   : > { %v1488_v48 = vshll.u32 %v4985_v13, 16  ;;  %1108 = vst.msk [vmem:[#allocation2 + $0xf8] sm:$0xff] %vm410_vm2, %v1058_v54  ;;  %2101 = vst.msk [vmem:[#allocation2 + $0xb8] sm:$0xff] %vm410_vm2, %v4996_v19  ;;  %v1510_v32 = vshrl.u32 %v4998_v27, 16  ;;  %v1512_v33 = vshll.u32 %v4998_v27, 16  ;;  %v5014_v19 = vld [vmem:[%s5262_s19 + $0x78] sm:$0xff]  }
  0xbe   : > { %v5623_v18 = vpop.permute.xlu0 %1234  ;;  %v2839_v38 = vld [vmem:[#allocation2 + $0xa8] sm:$0xff]  ;;  %v5011_v7 = vld [vmem:[%s5262_s19 + $0x5c] ss:$0 sps:$4 sm:$0x11]   ;;  %421 = vst.msk [vmem:[#allocation2 + $0x190] sm:$0xff] %vm410_vm2, %v5014_v19 }
  0xbf   : > { %v5628_v20 = vpop.permute.xlu1 %806  ;;  %v2838_v40 = vld [vmem:[#allocation2 + $0xa0] sm:$0xff]  ;;  %3298 = vmatprep.mubr.bf16.mxu0 %v2839_v38  ;;  %3428 = vmatmul.mubr.bf16.vlgmr.msra.gmra.mrb[16].mxu1 %v2820_v39  ;;  %1274 = vst.msk [vmem:[#allocation2 + $0xd0] sm:$0xff] %vm844_vm3, %v5623_v18  ;;  %v1490_v56 = vrot.slane %v1488_v48, 1  ;;  %v5003_v39 = vld [vmem:[%s5262_s19 + $0x54] sm:$0xff]  }
  0xc0   : > { %850 = vst.msk [vmem:[#allocation2 + $0xc8] sm:$0xff] %vm844_vm3, %v5628_v20  ;;  %3299 = vmatmul.mubr.bf16.gmra.mrb[16].mxu0 %v2838_v40  ;;  %v1486_v20 = vshrl.u32 %v4985_v13, 16  ;;  %v5000_v38 = vld [vmem:[%s5262_s19 + $0x60] sm:$0xfe]   ;;  %v5012_v15 = vld [vmem:[%s5262_s19 + $0x78] sm:$0xfe]  }
  0xc1   : > { %v5001_v40 = vld [vmem:[%s5262_s19 + $0x68] ss:$0 sps:$4 sm:$0x11]   ;;  %v1062_v42 = vrot.slane %v5000_v38, 1  ;;  %2102 = vst.msk [vmem:[#allocation2 + $0xe0] sm:$0xff] %vm410_vm2, %v5003_v39 }
  0xc2   : > { %v5639_v29 = vpop.permute.xlu0 %2456  ;;  %v2826_v53 = vld [vmem:[#allocation2 + $0x40] sm:$0xff]  ;;  %v1491_v18 = vor.u32 %v1490_v56, %v1486_v20  ;;  %v1063_v43 = vrot.slane %v5001_v40, 1  ;;  %v1524_v56 = vshll.u32 %v5004_v46, 16 }
  0xc3   : > { %v5641_v36 = vpop.permute.xlu1 %1910  ;;  %2496 = vst.msk [vmem:[#allocation2 + $0x68] sm:$0xff] %vm844_vm3, %v5639_v29  ;;  %3435 = vmatprep.mubr.bf16.mxu1 %v2826_v53  ;;  %v4989_v29 = vld [vmem:[%s5262_s19 + $0x48] sm:$0xff]   ;;  %v2825_v60 = vld [vmem:[#allocation2 + $0x38] sm:$0xff]  ;;  %v1522_v53 = vshrl.u32 %v5004_v46, 16 }
  0xc4   : > { %417 = vst.msk [vmem:[#allocation2 + $0xf0] sm:$0xff] %vm410_vm2, %v4989_v29  ;;  %v1496_v5 = vsel %vm603_vm0, %v1491_v18, %v1495_v57  ;;  %v1064_v20 = vsel %vm1037_vm1, %v1062_v42, %v1063_v43  ;;  %v5006_v29 = vld [vmem:[%s5262_s19 + $0x6c] sm:$0xfe]   ;;  %v1526_v62 = vrot.slane %v1524_v56, 1  ;;  %v1531_v18 = vrot.slane %v1529_v59, 1 }
  0xc5   : > { %1658 = vst.msk [vmem:[#allocation2 + $0x60] sm:$0xff] %vm410_vm2, %v1496_v5  ;;  %1110 = vst.msk [vmem:[#allocation2 + $0x148] sm:$0xff] %vm410_vm2, %v1064_v20  ;;  %v1065_v54 = vrot.slane %v5006_v29, 1  ;;  %v5019_v40 = vld [vmem:[%s5262_s19 + $0x84] sm:$0xfe]  }
  0xc6   : > { %v5653_v50 = vpop.permute.xlu0 %1236  ;;  %v2844_v61 = vld [vmem:[#allocation2 + $0xd0] sm:$0xff]  ;;  %1953 = vst.msk [vmem:[#allocation2 + $0x60] sm:$0xff] %vm844_vm3, %v5641_v36 }
  0xc7   : > { %v5660_v58 = vpop.permute.xlu1 %808  ;;  %v2843_v0 = vld [vmem:[#allocation2 + $0xc8] sm:$0xff]  ;;  %3436 = vmatmul.mubr.bf16.gmra.mrb[20].mxu1 %v2825_v60  ;;  %1275 = vst.msk [vmem:[#allocation2 + $0xf8] sm:$0xff] %vm844_vm3, %v5653_v50  ;;  %3306 = vmatprep.mubr.bf16.mxu0 %v2844_v61  ;;  %v4997_v36 = vld [vmem:[%s6235_s2 + $0x110] sm:$0xff]  }
  0xc8   : > { %851 = vst.msk [vmem:[#allocation2 + $0xf0] sm:$0xff] %vm844_vm3, %v5660_v58  ;;  %v1500_v58 = vshll.u32 %v4991_v2, 16  ;;  %3307 = vmatmul.mubr.bf16.gmra.mrb[20].mxu0 %v2843_v0  ;;  %4689 = vmatprep.subr.bf16.mxu0 %v4997_v36  ;;  %v5008_v60 = vld [vmem:[%s5262_s19 + $0x6c] sm:$0xff]   ;;  %v5009_v0 = vld [vmem:[%s5262_s19 + $0x60] sm:$0xff]  }
  0xc9   : > { %4690 = vmatpush3.bf16.msra.mxu0 %v4997_v36  ;;  %420 = vst.msk [vmem:[#allocation2 + $0x168] sm:$0xff] %vm410_vm2, %v5008_v60  ;;  %2103 = vst.msk [vmem:[#allocation2 + $0x108] sm:$0xff] %vm410_vm2, %v5009_v0  ;;  %v5024_v59 = vld [vmem:[%s5262_s19 + $0x74] ss:$0 sps:$4 sm:$0x11]  }
  0xca   : > { %v5681_v1 = vpop.permute.xlu0 %2458  ;;  %v2831_v12 = vld [vmem:[#allocation2 + $0x68] sm:$0xff]  ;;  %v1502_v50 = vrot.slane %v1500_v58, 1 }
  0xcb   : > { %v5687_v4 = vpop.permute.xlu1 %1912  ;;  %2497 = vst.msk [vmem:[#allocation2 + $0x90] sm:$0xff] %vm844_vm3, %v5681_v1  ;;  %v1059_v1 = vrot.slane %v4993_v8, 1  ;;  %3443 = vmatprep.mubr.bf16.mxu1 %v2831_v12 }
  0xcc   : > { %v1503_v21 = vor.u32 %v1502_v50, %v1498_v6 }
  0xcd   : > { %v1061_v22 = vsel %vm1037_vm1, %v1059_v1, %v1060_v17  ;;  %v2830_v31 = vld [vmem:[#allocation2 + $0x60] sm:$0xff]  ;;  %v1541_v1 = vshll.u32 %v5011_v7, 16 }
  0xce   : > { %v5694_v16 = vpop.permute.xlu0 %1238  ;;  %v1508_v24 = vsel %vm603_vm0, %v1503_v21, %v1507_v14  ;;  %1109 = vst.msk [vmem:[#allocation2 + $0x120] sm:$0xff] %vm410_vm2, %v1061_v22  ;;  %v2849_v26 = vld [vmem:[#allocation2 + $0xf8] sm:$0xff]  ;;  %v5013_v17 = vld [vmem:[%s5262_s19 + $0x80] ss:$0 sps:$4 sm:$0x11]  }
  0xcf   : > { %v5698_v25 = vpop.permute.xlu1 %810  ;;  %v2848_v23 = vld [vmem:[#allocation2 + $0xf0] sm:$0xff]  ;;  %1659 = vst.msk [vmem:[#allocation2 + $0x88] sm:$0xff] %vm410_vm2, %v1508_v24  ;;  %3314 = vmatprep.mubr.bf16.mxu0 %v2849_v26  ;;  %3444 = vmatmul.mubr.bf16.gmra.mrb[24].mxu1 %v2830_v31  ;;  %v1543_v22 = vrot.slane %v1541_v1, 1  ;;  %v1069_v24 = vrot.slane %v5013_v17, 1  ;;  %v5017_v31 = vld [vmem:[%s5262_s19 + $0x60] sm:$0xff]  }
  0xd0   : > { %852 = vst.msk [vmem:[#allocation2 + $0x118] sm:$0xff] %vm844_vm3, %v5698_v25  ;;  %1276 = vst.msk [vmem:[#allocation2 + $0x120] sm:$0xff] %vm844_vm3, %v5694_v16  ;;  %v4999_v25 = vld [vmem:[%s5262_s19 + $0x44] ss:$0 sps:$4 sm:$0x11]   ;;  %3315 = vmatmul.mubr.bf16.gmra.mrb[24].mxu0 %v2848_v23  ;;  %v1514_v16 = vrot.slane %v1512_v33, 1 }
  0xd1   : > { %1954 = vst.msk [vmem:[#allocation2 + $0x88] sm:$0xff] %vm844_vm3, %v5687_v4  ;;  %v1517_v37 = vshll.u32 %v4999_v25, 16  ;;  %v1068_v23 = vrot.slane %v5012_v15, 1  ;;  %v1548_v38 = vshll.u32 %v5017_v31, 16 }
  0xd2   : > { %v5708_v41 = vpop.permute.xlu0 %2460  ;;  %v2836_v30 = vld [vmem:[#allocation2 + $0x90] sm:$0xff]  ;;  %v1515_v4 = vor.u32 %v1514_v16, %v1510_v32  ;;  %v5018_v32 = vld [vmem:[%s5262_s19 + $0x68] ss:$0 sps:$4 sm:$0x11]  }
  0xd3   : > { %v5717_v44 = vpop.permute.xlu1 %1914  ;;  %2498 = vst.msk [vmem:[#allocation2 + $0xb8] sm:$0xff] %vm844_vm3, %v5708_v41  ;;  %3451 = vmatprep.mubr.bf16.mxu1 %v2836_v30  ;;  %v1519_v41 = vrot.slane %v1517_v37, 1  ;;  %v1070_v25 = vsel %vm1037_vm1, %v1068_v23, %v1069_v24  ;;  %v1546_v37 = vshrl.u32 %v5017_v31, 16  ;;  %v1553_v39 = vshll.u32 %v5018_v32, 16  ;;  %v5030_v23 = vld [vmem:[%s5262_s19 + $0x24] sm:$0xfe]  }
  0xd4   : > { %1112 = vst.msk [vmem:[#allocation2 + $0x198] sm:$0xff] %vm410_vm2, %v1070_v25  ;;  %v1550_v43 = vrot.slane %v1548_v38, 1  ;;  %v5031_v24 = vld [vmem:[%s5262_s19 + $0x2c] ss:$0 sps:$4 sm:$0x11]   ;;  %v5039_v38 = vld [vmem:[%s5262_s19 + $0x9c] sm:$0xff]  }
  0xd5   : > { %v1520_v47 = vsel %vm603_vm0, %v1515_v4, %v1519_v41  ;;  %v5020_v41 = vld [vmem:[%s5262_s19 + $0x8c] ss:$0 sps:$4 sm:$0x11]   ;;  %v5021_v4 = vld [vmem:[%s5262_s19 + $0x84] sm:$0xff]   ;;  %v2720_v25 = vrot.slane %v5031_v24, 1  ;;  %2108 = vst.msk [vmem:[#allocation2 + $0x1d0] sm:$0xff] %vm410_vm2, %v5039_v38 }
  0xd6   : > { %v5730_v55 = vpop.permute.xlu0 %1240  ;;  %1660 = vst.msk [vmem:[#allocation2 + $0xb0] sm:$0xff] %vm410_vm2, %v1520_v47  ;;  %v1072_v46 = vrot.slane %v5020_v41, 1  ;;  %422 = vst.msk [vmem:[#allocation2 + $0x1b8] sm:$0xff] %vm410_vm2, %v5021_v4  ;;  %v5022_v47 = vld [vmem:[%s5262_s19 + $0x78] sm:$0xff]  }
  0xd7   : > { %v5734_v63 = vpop.permute.xlu1 %812  ;;  %v2853_v13 = vld [vmem:[#allocation2 + $0x118] sm:$0xff]  ;;  %v2854_v48 = vld [vmem:[#allocation2 + $0x120] sm:$0xff]  ;;  %1955 = vst.msk [vmem:[#allocation2 + $0xb0] sm:$0xff] %vm844_vm3, %v5717_v44  ;;  %1277 = vst.msk [vmem:[#allocation2 + $0x148] sm:$0xff] %vm844_vm3, %v5730_v55  ;;  %v1527_v44 = vor.u32 %v1526_v62, %v1522_v53 }
  0xd8   : > { %853 = vst.msk [vmem:[#allocation2 + $0x140] sm:$0xff] %vm844_vm3, %v5734_v63  ;;  %3322 = vmatprep.mubr.bf16.mxu0 %v2854_v48  ;;  %v2835_v52 = vld [vmem:[#allocation2 + $0x88] sm:$0xff]  ;;  %v5007_v63 = vld [vmem:[%s5262_s19 + $0x74] ss:$0 sps:$4 sm:$0x11]   ;;  %v1551_v48 = vor.u32 %v1550_v43, %v1546_v37 }
  0xd9   : > { %3452 = vmatmul.mubr.bf16.gmra.mrb[28].mxu1 %v2835_v52  ;;  %3323 = vmatmul.mubr.bf16.gmra.mrb[28].mxu0 %v2853_v13  ;;  %v1066_v3 = vrot.slane %v5007_v63, 1  ;;  %v5010_v55 = vld [vmem:[%s5262_s19 + $0x54] sm:$0xff]   ;;  %v1532_v61 = vsel %vm603_vm0, %v1527_v44, %v1531_v18  ;;  %v1071_v13 = vrot.slane %v5019_v40, 1  ;;  %2105 = vst.msk [vmem:[#allocation2 + $0x158] sm:$0xff] %vm410_vm2, %v5022_v47  ;;  %v5023_v52 = vld [vmem:[%s5262_s19 + $0x6c] sm:$0xff]   ;;  %v1565_v18 = vshll.u32 %v5024_v59, 16 }
  0xda   : > { %v2463_v10 = vpop.permute.xlu0 %2462  ;;  %v2841_v57 = vld [vmem:[#allocation2 + $0xb8] sm:$0xff]  ;;  %v1534_v8 = vshrl.u32 %v5010_v55, 16  ;;  %1661 = vst.msk [vmem:[#allocation2 + $0xd8] sm:$0xff] %vm410_vm2, %v1532_v61  ;;  %v1558_v60 = vshrl.u32 %v5023_v52, 16  ;;  %v1560_v62 = vshll.u32 %v5023_v52, 16  ;;  %v5040_v40 = vld [vmem:[%s5262_s19 + $0x90] sm:$0xff]  }
  0xdb   : > { %v5755_v9 = vpop.permute.xlu1 %1916  ;;  %2499 = vst.msk [vmem:[#allocation2 + $0xe0] sm:$0xff] %vm844_vm3, %v2463_v10  ;;  %3459 = vmatprep.mubr.bf16.mxu1 %v2841_v57  ;;  %v1067_v6 = vsel %vm1037_vm1, %v1065_v54, %v1066_v3  ;;  %v1536_v10 = vshll.u32 %v5010_v55, 16  ;;  %v1073_v49 = vsel %vm1037_vm1, %v1071_v13, %v1072_v46  ;;  %v5025_v54 = vld [vmem:[%s5262_s19 + $0x84] sm:$0xff]   ;;  %v1567_v44 = vrot.slane %v1565_v18, 1  ;;  %v5035_v37 = vld [vmem:[%s5262_s19 + $0x30] sm:$0xfe]  }
  0xdc   : > { %1111 = vst.msk [vmem:[#allocation2 + $0x170] sm:$0xff] %vm410_vm2, %v1067_v6  ;;  %1113 = vst.msk [vmem:[#allocation2 + $0x1c0] sm:$0xff] %vm410_vm2, %v1073_v49  ;;  %v1562_v0 = vrot.slane %v1560_v62, 1  ;;  %v5027_v3 = vld [vmem:[%s5262_s19 + $0x80] ss:$0 sps:$4 sm:$0x11]  }
  0xdd   : > { %1956 = vst.msk [vmem:[#allocation2 + $0xd8] sm:$0xff] %vm844_vm3, %v5755_v9  ;;  %v1538_v14 = vrot.slane %v1536_v10, 1  ;;  %v5015_v9 = vld [vmem:[%s5262_s19 + $0x6c] sm:$0xff]   ;;  %v5028_v10 = vld [vmem:[%s5262_s19 + $0x18] sm:$0xfe]   ;;  %v1594_v47 = vshrl.u32 %v5040_v40, 16 }
  0xde   : > { %v5771_v28 = vpop.permute.xlu0 %1242  ;;  %v2859_v12 = vld [vmem:[#allocation2 + $0x148] sm:$0xff]  ;;  %v2840_v50 = vld [vmem:[#allocation2 + $0xb0] sm:$0xff]  ;;  %2104 = vst.msk [vmem:[#allocation2 + $0x130] sm:$0xff] %vm410_vm2, %v5015_v9  ;;  %2106 = vst.msk [vmem:[#allocation2 + $0x180] sm:$0xff] %vm410_vm2, %v5025_v54  ;;  %v1563_v55 = vor.u32 %v1562_v0, %v1558_v60  ;;  %v2716_v19 = vrot.slane %v5028_v10, 1 }
  0xdf   : > { %v815_v35 = vpop.permute.xlu1 %814  ;;  %v2858_v58 = vld [vmem:[#allocation2 + $0x140] sm:$0xff]  ;;  %1278 = vst.msk [vmem:[#allocation2 + $0x170] sm:$0xff] %vm844_vm3, %v5771_v28  ;;  %3330 = vmatprep.mubr.bf16.mxu0 %v2859_v12  ;;  %v1539_v36 = vor.u32 %v1538_v14, %v1534_v8  ;;  %v5016_v28 = vld [vmem:[%s6235_s2 + $0x118] sm:$0xff]   ;;  %v5032_v6 = vld [vmem:[%s5262_s19 + $0x90] sm:$0xff]   ;;  %v1577_v8 = vshll.u32 %v5027_v3, 16 }
  0xe0   : > { %854 = vst.msk [vmem:[#allocation2 + $0x168] sm:$0xff] %vm844_vm3, %v815_v35  ;;  %4691 = vmatprep.subr.bf16.mxu0 %v5016_v28  ;;  %v1568_v12 = vsel %vm603_vm0, %v1563_v55, %v1567_v44  ;;  %v5034_v31 = vld [vmem:[%s5262_s19 + $0x8c] ss:$0 sps:$4 sm:$0x11]   ;;  %v5037_v46 = vld [vmem:[%s5262_s19 + $0x3c] sm:$0xfe]  }
  0xe1   : > { %3460 = vmatmul.mubr.bf16.gmra.mrb[32].mxu1 %v2840_v50  ;;  %3331 = vmatmul.mubr.bf16.gmra.mrb[32].mxu0 %v2858_v58  ;;  %v1544_v27 = vsel %vm603_vm0, %v1539_v36, %v1543_v22  ;;  %2107 = vst.msk [vmem:[#allocation2 + $0x1a8] sm:$0xff] %vm410_vm2, %v5032_v6  ;;  %1664 = vst.msk [vmem:[#allocation2 + $0x150] sm:$0xff] %vm410_vm2, %v1568_v12  ;;  %v1579_v15 = vrot.slane %v1577_v8, 1  ;;  %v5038_v49 = vld [vmem:[%s5262_s19 + $0x44] ss:$0 sps:$4 sm:$0x11]  }
  0xe2   : > { %v2465_v45 = vpop.permute.xlu0 %2464  ;;  %v2846_v11 = vld [vmem:[#allocation2 + $0xe0] sm:$0xff]  ;;  %1662 = vst.msk [vmem:[#allocation2 + $0x100] sm:$0xff] %vm410_vm2, %v1544_v27  ;;  %4692 = vmatpush3.bf16.msra.mxu0 %v5016_v28  ;;  %v2719_v28 = vrot.slane %v5030_v23, 1  ;;  %v2726_v59 = vrot.slane %v5038_v49, 1  ;;  %v5044_v6 = vld [vmem:[%s5262_s19 + $0x54] sm:$0xfe]  }
  0xe3   : > { %v5792_v51 = vpop.permute.xlu1 %1918  ;;  %2500 = vst.msk [vmem:[#allocation2 + $0x108] sm:$0xff] %vm844_vm3, %v2465_v45  ;;  %3467 = vmatprep.mubr.bf16.mxu1 %v2846_v11  ;;  %v1555_v45 = vrot.slane %v1553_v39, 1  ;;  %v5029_v11 = vld [vmem:[%s5262_s19 + $0x20] ss:$0 sps:$4 sm:$0x11]  }
  0xe4   : > { %1957 = vst.msk [vmem:[#allocation2 + $0x100] sm:$0xff] %vm844_vm3, %v5792_v51  ;;  %v2845_v34 = vld [vmem:[#allocation2 + $0xd8] sm:$0xff]  ;;  %v2721_v32 = vsel %vm1037_vm1, %v2719_v28, %v2720_v25  ;;  %v5043_v44 = vld [vmem:[%s5262_s19 + $0x50] ss:$0 sps:$4 sm:$0x11]  }
  0xe5   : > { %v1556_v53 = vsel %vm603_vm0, %v1551_v48, %v1555_v45  ;;  %2773 = vst.msk [vmem:[#allocation2 + $0x48] sm:$0xff] %vm410_vm2, %v2721_v32  ;;  %v2722_v45 = vrot.slane %v5035_v37, 1  ;;  %v5041_v60 = vld [vmem:[%s5262_s19 + $0x98] ss:$0 sps:$4 sm:$0x11]  }
  0xe6   : > { %v1245_v2 = vpop.permute.xlu0 %1244  ;;  %v2864_v33 = vld [vmem:[#allocation2 + $0x170] sm:$0xff]  ;;  %1663 = vst.msk [vmem:[#allocation2 + $0x128] sm:$0xff] %vm410_vm2, %v1556_v53  ;;  %v2725_v53 = vrot.slane %v5037_v46, 1  ;;  %v1601_v0 = vshll.u32 %v5041_v60, 16  ;;  %v5058_v60 = vld [vmem:[%s5262_s19 + $0x84] sm:$0xfe]  }
  0xe7   : > { %v817_v5 = vpop.permute.xlu1 %816  ;;  %v2863_v30 = vld [vmem:[#allocation2 + $0x168] sm:$0xff]  ;;  %1279 = vst.msk [vmem:[#allocation2 + $0x198] sm:$0xff] %vm844_vm3, %v1245_v2  ;;  %3338 = vmatprep.mubr.bf16.mxu0 %v2864_v33  ;;  %v5026_v2 = vld [vmem:[%s5262_s19 + $0x78] sm:$0xff]   ;;  %v5052_v38 = vld [vmem:[%s5262_s19 + $0x74] ss:$0 sps:$4 sm:$0x11]  }
  0xe8   : > { %855 = vst.msk [vmem:[#allocation2 + $0x190] sm:$0xff] %vm844_vm3, %v817_v5  ;;  %v1570_v5 = vshrl.u32 %v5026_v2, 16  ;;  %v1572_v61 = vshll.u32 %v5026_v2, 16  ;;  %v5042_v2 = vld [vmem:[%s5262_s19 + $0x48] sm:$0xfe]   ;;  %v1603_v55 = vrot.slane %v1601_v0, 1 }
  0xe9   : > { %3468 = vmatmul.mubr.bf16.gmra.mrb[36].mxu1 %v2845_v34  ;;  %3339 = vmatmul.mubr.bf16.gmra.mrb[36].mxu0 %v2863_v30  ;;  %v5033_v30 = vld [vmem:[%s5262_s19 + $0x84] sm:$0xff]   ;;  %v5045_v10 = vld [vmem:[%s5262_s19 + $0x5c] ss:$0 sps:$4 sm:$0x11]   ;;  %v5053_v25 = vld [vmem:[%s5262_s19 + $0xb4] sm:$0xff]  }
  0xea   : > { %v2467_v21 = vpop.permute.xlu0 %2466  ;;  %v2851_v16 = vld [vmem:[#allocation2 + $0x108] sm:$0xff]  ;;  %v1574_v50 = vrot.slane %v1572_v61, 1  ;;  %v1582_v33 = vshrl.u32 %v5033_v30, 16  ;;  %v1584_v34 = vshll.u32 %v5033_v30, 16  ;;  %v2729_v61 = vrot.slane %v5043_v44, 1  ;;  %2110 = vst.msk [vmem:[#allocation2 + $0x220] sm:$0xff] %vm410_vm2, %v5053_v25 }
  0xeb   : > { %v1921_v26 = vpop.permute.xlu1 %1920  ;;  %2501 = vst.msk [vmem:[#allocation2 + $0x130] sm:$0xff] %vm844_vm3, %v2467_v21  ;;  %3475 = vmatprep.mubr.bf16.mxu1 %v2851_v16  ;;  %v2850_v51 = vld [vmem:[#allocation2 + $0x100] sm:$0xff]  ;;  %v2717_v21 = vrot.slane %v5029_v11, 1  ;;  %v5036_v16 = vld [vmem:[%s5262_s19 + $0x38] ss:$0 sps:$4 sm:$0x11]  }
  0xec   : > { %1958 = vst.msk [vmem:[#allocation2 + $0x128] sm:$0xff] %vm844_vm3, %v1921_v26  ;;  %v1575_v22 = vor.u32 %v1574_v50, %v1570_v5  ;;  %v2723_v13 = vrot.slane %v5036_v16, 1  ;;  %v2728_v5 = vrot.slane %v5042_v2, 1  ;;  %v5047_v11 = vld [vmem:[%s5262_s19 + $0x9c] sm:$0xff]   ;;  %v5051_v37 = vld [vmem:[%s5262_s19 + $0x6c] sm:$0xfe]  }
  0xed   : > { %v2718_v26 = vsel %vm1037_vm1, %v2716_v19, %v2717_v21  ;;  %v1606_v19 = vshrl.u32 %v5047_v11, 16  ;;  %v1608_v21 = vshll.u32 %v5047_v11, 16  ;;  %v5050_v28 = vld [vmem:[%s5262_s19 + $0x68] ss:$0 sps:$4 sm:$0x11]   ;;  %v2743_v2 = vrot.slane %v5058_v60, 1 }
  0xee   : > { %v1247_v35 = vpop.permute.xlu0 %1246  ;;  %v2869_v56 = vld [vmem:[#allocation2 + $0x198] sm:$0xff]  ;;  %v1580_v27 = vsel %vm603_vm0, %v1575_v22, %v1579_v15  ;;  %2772 = vst.msk [vmem:[#allocation2 + $0x20] sm:$0xff] %vm410_vm2, %v2718_v26  ;;  %v2724_v52 = vsel %vm1037_vm1, %v2722_v45, %v2723_v13  ;;  %v2732_v15 = vrot.slane %v5045_v10, 1  ;;  %v5049_v26 = vld [vmem:[%s5262_s19 + $0x60] sm:$0xfe]   ;;  %v5067_v11 = vld [vmem:[%s5302_s30 + $0xc] sm:$0xff]  }
  0xef   : > { %v819_v42 = vpop.permute.xlu1 %818  ;;  %v2868_v57 = vld [vmem:[#allocation2 + $0x190] sm:$0xff]  ;;  %1280 = vst.msk [vmem:[#allocation2 + $0x1c0] sm:$0xff] %vm844_vm3, %v1247_v35  ;;  %3346 = vmatprep.mubr.bf16.mxu0 %v2869_v56  ;;  %v1589_v35 = vshll.u32 %v5034_v31, 16  ;;  %v1596_v56 = vshll.u32 %v5040_v40, 16  ;;  %v1610_v24 = vrot.slane %v1608_v21, 1 }
  0xf0   : > { %856 = vst.msk [vmem:[#allocation2 + $0x1b8] sm:$0xff] %vm844_vm3, %v819_v42  ;;  %v1586_v42 = vrot.slane %v1584_v34, 1  ;;  %v5055_v13 = vld [vmem:[%s5262_s19 + $0xb0] ss:$0 sps:$4 sm:$0x11]  }
  0xf1   : > { %3476 = vmatmul.mubr.bf16.gmra.mrb[40].mxu1 %v2850_v51  ;;  %3347 = vmatmul.mubr.bf16.gmra.mrb[40].mxu0 %v2868_v57  ;;  %1665 = vst.msk [vmem:[#allocation2 + $0x178] sm:$0xff] %vm410_vm2, %v1580_v27  ;;  %v1591_v4 = vrot.slane %v1589_v35, 1  ;;  %2774 = vst.msk [vmem:[#allocation2 + $0x70] sm:$0xff] %vm410_vm2, %v2724_v52  ;;  %v1598_v62 = vrot.slane %v1596_v56, 1  ;;  %v1611_v31 = vor.u32 %v1610_v24, %v1606_v19  ;;  %v2735_v35 = vrot.slane %v5050_v28, 1  ;;  %v5060_v56 = vld [vmem:[%s5302_s30] sm:$0xff]  }
  0xf2   : > { %v2469_v20 = vpop.permute.xlu0 %2468  ;;  %v2856_v29 = vld [vmem:[#allocation2 + $0x130] sm:$0xff]  ;;  %v1587_v48 = vor.u32 %v1586_v42, %v1582_v33  ;;  %v2734_v33 = vrot.slane %v5049_v26, 1  ;;  %v2738_v42 = vrot.slane %v5052_v38, 1  ;;  %v1625_v49 = vshll.u32 %v5055_v13, 16  ;;  %v5056_v52 = vld [vmem:[%s5262_s19 + $0x78] sm:$0xfe]  }
  0xf3   : > { %2502 = vst.msk [vmem:[#allocation2 + $0x158] sm:$0xff] %vm844_vm3, %v2469_v20  ;;  %3483 = vmatprep.mubr.bf16.mxu1 %v2856_v29  ;;  %v1923_v7 = vpop.permute.xlu1 %1922  ;;  %v2855_v36 = vld [vmem:[#allocation2 + $0x128] sm:$0xff]  ;;  %v1599_v54 = vor.u32 %v1598_v62, %v1594_v47  ;;  %v5072_v13 = vld [vmem:[%s5262_s19 + $0xb4] sm:$0xfe]  }
  0xf4   : > { %1959 = vst.msk [vmem:[#allocation2 + $0x150] sm:$0xff] %vm844_vm3, %v1923_v7  ;;  %v1592_v57 = vsel %vm603_vm0, %v1587_v48, %v1591_v4  ;;  %v2827_v29 = vld [vmem:[#allocation2 + $0x48] sm:$0xff]  ;;  %v2736_v40 = vsel %vm1037_vm1, %v2734_v33, %v2735_v35 }
  0xf5   : > { %v2822_v20 = vld [vmem:[#allocation2 + $0x20] sm:$0xff]  ;;  %1666 = vst.msk [vmem:[#allocation2 + $0x1a0] sm:$0xff] %vm410_vm2, %v1592_v57  ;;  %v1604_v50 = vsel %vm603_vm0, %v1599_v54, %v1603_v55  ;;  %v5054_v4 = vld [vmem:[%s5262_s19 + $0xa8] sm:$0xff]   ;;  %2778 = vst.msk [vmem:[#allocation2 + $0x110] sm:$0xff] %vm410_vm2, %v2736_v40 }
  0xf6   : > { %v2471_v63 = vpop.permute.xlu0 %2470  ;;  %v2874_v14 = vld [vmem:[#allocation2 + $0x1c0] sm:$0xff]  ;;  %1667 = vst.msk [vmem:[#allocation2 + $0x1c8] sm:$0xff] %vm410_vm2, %v1604_v50  ;;  %v1618_v46 = vshrl.u32 %v5054_v4, 16  ;;  %v1620_v47 = vshll.u32 %v5054_v4, 16  ;;  %2128 = vst.msk [vmem:[#allocation2 + $0x248] sm:$0xff] %vm410_vm2, %v5060_v56  ;;  %v5061_v55 = vld [vmem:[%s5262_s19 + $0xb4] sm:$0xff]  }
  0xf7   : > { %2503 = vst.msk [vmem:[#allocation2 + $0x180] sm:$0xff] %vm844_vm3, %v2471_v63  ;;  %v2873_v1 = vld [vmem:[#allocation2 + $0x1b8] sm:$0xff]  ;;  %3354 = vmatprep.mubr.bf16.mxu0 %v2874_v14  ;;  %v1925_v9 = vpop.permute.xlu1 %1924  ;;  %v2727_v63 = vsel %vm1037_vm1, %v2725_v53, %v2726_v59  ;;  %v2730_v14 = vsel %vm1037_vm1, %v2728_v5, %v2729_v61  ;;  %v5057_v53 = vld [vmem:[%s5262_s19 + $0x80] ss:$0 sps:$4 sm:$0x11]   ;;  %v1627_v59 = vrot.slane %v1625_v49, 1 }
  0xf8   : > { %1960 = vst.msk [vmem:[#allocation2 + $0x178] sm:$0xff] %vm844_vm3, %v1925_v9  ;;  %v2832_v12 = vld [vmem:[#allocation2 + $0x70] sm:$0xff]  ;;  %v1622_v48 = vrot.slane %v1620_v47, 1  ;;  %v5062_v61 = vld [vmem:[%s5262_s19 + $0xbc] ss:$0 sps:$4 sm:$0x11]  }
  0xf9   : > { %3484 = vmatmul.mubr.bf16.gmra.mrb[44].mxu1 %v2855_v36  ;;  %3355 = vmatmul.mubr.bf16.gmra.mrb[44].mxu0 %v2873_v1  ;;  %2775 = vst.msk [vmem:[#allocation2 + $0x98] sm:$0xff] %vm410_vm2, %v2727_v63  ;;  %v2731_v1 = vrot.slane %v5044_v6, 1  ;;  %2776 = vst.msk [vmem:[#allocation2 + $0xc0] sm:$0xff] %vm410_vm2, %v2730_v14  ;;  %v2741_v63 = vrot.slane %v5057_v53, 1  ;;  %v1632_v10 = vshll.u32 %v5061_v55, 16  ;;  %v5068_v50 = vld [vmem:[%s5302_s30] sm:$0xff]  }
  0xfa   : > { %v2473_v58 = vpop.permute.xlu0 %2472  ;;  %v2861_v17 = vld [vmem:[#allocation2 + $0x158] sm:$0xff]  ;;  %4693 = vmatprep.mubr.msk.bf16.mxu0 %vm410_vm2, %v2822_v20  ;;  %v1623_v57 = vor.u32 %v1622_v48, %v1618_v46  ;;  %2129 = vst.msk [vmem:[#allocation2 + $0x270] sm:$0xff] %vm410_vm2, %v5067_v11  ;;  %v1685_v26 = vshll.u32 %v5068_v50, 16  ;;  %v5069_v35 = vld [vmem:[%s5302_s30 + $0x8] ss:$0 sps:$4 sm:$0x11]  }
  0xfb   : > { %2504 = vst.msk [vmem:[#allocation2 + $0x1a8] sm:$0xff] %vm844_vm3, %v2473_v58  ;;  %3491 = vmatprep.mubr.bf16.mxu1 %v2861_v17  ;;  %v2860_v41 = vld [vmem:[#allocation2 + $0x150] sm:$0xff]  ;;  %v1927_v51 = vpop.permute.xlu1 %1926  ;;  %v5046_v58 = vld [vmem:[%s5262_s19 + $0xa8] sm:$0xff]   ;;  %v5048_v17 = vld [vmem:[%s5262_s19 + $0xa4] ss:$0 sps:$4 sm:$0x11]   ;;  %v2733_v22 = vsel %vm1037_vm1, %v2731_v1, %v2732_v15 }
  0xfc   : > { %1961 = vst.msk [vmem:[#allocation2 + $0x1a0] sm:$0xff] %vm844_vm3, %v1927_v51  ;;  %v1613_v9 = vshll.u32 %v5048_v17, 16  ;;  %v2852_v54 = vld [vmem:[#allocation2 + $0x110] sm:$0xff]  ;;  %v1628_v0 = vsel %vm603_vm0, %v1623_v57, %v1627_v59  ;;  %v1634_v14 = vrot.slane %v1632_v10, 1  ;;  %v1687_v33 = vrot.slane %v1685_v26, 1 }
  0xfd   : > { %2109 = vst.msk [vmem:[#allocation2 + $0x1f8] sm:$0xff] %vm410_vm2, %v5046_v58  ;;  %2777 = vst.msk [vmem:[#allocation2 + $0xe8] sm:$0xff] %vm410_vm2, %v2733_v22  ;;  %v5063_v1 = vld [vmem:[%s5262_s19 + $0x90] sm:$0xfe]   ;;  %v5070_v40 = vld [vmem:[%s5262_s19 + $0xa8] sm:$0xfe]  }
  0xfe   : > { %v2475_v39 = vpop.permute.xlu0 %2474  ;;  %v2866_v43 = vld [vmem:[#allocation2 + $0x180] sm:$0xff]  ;;  %v1615_v32 = vrot.slane %v1613_v9, 1  ;;  %1669 = vst.msk [vmem:[#allocation2 + $0x218] sm:$0xff] %vm410_vm2, %v1628_v0  ;;  %v5064_v15 = vld [vmem:[%s5262_s19 + $0x98] ss:$0 sps:$4 sm:$0x11]  }
  0xff   : > { %2505 = vst.msk [vmem:[#allocation2 + $0x1d0] sm:$0xff] %vm844_vm3, %v2475_v39  ;;  %v2865_v18 = vld [vmem:[#allocation2 + $0x178] sm:$0xff]  ;;  %v1929_v8 = vpop.permute.xlu1 %1928  ;;  %v2747_v22 = vrot.slane %v5064_v15, 1  ;;  %v5066_v9 = vld [vmem:[%s5262_s19 + $0xa4] ss:$0 sps:$4 sm:$0x11]  }
 0x100   : > { %1962 = vst.msk [vmem:[#allocation2 + $0x1c8] sm:$0xff] %vm844_vm3, %v1929_v8  ;;  %v2837_v36 = vld [vmem:[#allocation2 + $0x98] sm:$0xff]  ;;  %v2842_v39 = vld [vmem:[#allocation2 + $0xc0] sm:$0xff]  ;;  %v1616_v16 = vsel %vm603_vm0, %v1611_v31, %v1615_v32  ;;  %v1630_v8 = vshrl.u32 %v5061_v55, 16  ;;  %v1683_v31 = vshrl.u32 %v5068_v50, 16  ;;  %v2750_v32 = vrot.slane %v5066_v9, 1 }
 0x101   : > { %3492 = vmatmul.mubr.bf16.gmra.mrb[48].mxu1 %v2860_v41  ;;  %4694 = vmatmul.mubr.msk.bf16.vlgmr.msra.gmra.mrb[48].mxu0 %vm410_vm2, %v2827_v29  ;;  %1668 = vst.msk [vmem:[#allocation2 + $0x1f0] sm:$0xff] %vm410_vm2, %v1616_v16  ;;  %v2737_v41 = vrot.slane %v5051_v37, 1  ;;  %v2740_v29 = vrot.slane %v5056_v52, 1  ;;  %v1690_v16 = vshll.u32 %v5069_v35, 16  ;;  %v2755_v49 = vrot.slane %v5072_v13, 1 }
 0x102   : > { %3499 = vmatprep.mubr.bf16.mxu1 %v2866_v43  ;;  %v2871_v3 = vld [vmem:[#allocation2 + $0x1a8] sm:$0xff]  ;;  %v2477_v7 = vpop.permute.xlu0 %2476  ;;  %4697 = vmatprep.mubr.msk.bf16.mxu0 %vm410_vm2, %v2832_v12  ;;  %v1637_v12 = vshll.u32 %v5062_v61, 16  ;;  %v1635_v21 = vor.u32 %v1634_v14, %v1630_v8  ;;  %v5073_v46 = vld [vmem:[%s5262_s19 + $0xbc] ss:$0 sps:$4 sm:$0x11]  }
 0x103   : > { %2506 = vst.msk [vmem:[#allocation2 + $0x1f8] sm:$0xff] %vm844_vm3, %v2477_v7  ;;  %v2870_v23 = vld [vmem:[#allocation2 + $0x1a0] sm:$0xff]  ;;  %v2739_v45 = vsel %vm1037_vm1, %v2737_v41, %v2738_v42  ;;  %v2742_v44 = vsel %vm1037_vm1, %v2740_v29, %v2741_v63  ;;  %v5071_v42 = vld [vmem:[%s5262_s19 + $0xb0] ss:$0 sps:$4 sm:$0x11]   ;;  %v1692_v4 = vrot.slane %v1690_v16, 1 }
 0x104   : > { %v2847_v43 = vld [vmem:[#allocation2 + $0xe8] sm:$0xff]  ;;  %2779 = vst.msk [vmem:[#allocation2 + $0x138] sm:$0xff] %vm410_vm2, %v2739_v45  ;;  %2780 = vst.msk [vmem:[#allocation2 + $0x160] sm:$0xff] %vm410_vm2, %v2742_v44  ;;  %v1639_v17 = vrot.slane %v1637_v12, 1  ;;  %v2753_v45 = vrot.slane %v5071_v42, 1 }
 0x105   : > { %v5074_v53 = vld [vmem:[%s5302_s30] sm:$0xfe]   ;;  %v5075_v56 = vld [vmem:[%s5302_s30 + $0x8] ss:$0 sps:$4 sm:$0x11]  }
 0x106   : > { %v2876_v27 = vld [vmem:[#allocation2 + $0x1d0] sm:$0xff]  ;;  %v1931_v34 = vpop.permute.xlu1 %1930  ;;  %v1640_v28 = vsel %vm603_vm0, %v1635_v21, %v1639_v17  ;;  %v2808_v60 = vrot.slane %v5074_v53, 1 }
 0x107   : > { %1963 = vst.msk [vmem:[#allocation2 + $0x1f0] sm:$0xff] %vm844_vm3, %v1931_v34  ;;  %v2875_v20 = vld [vmem:[#allocation2 + $0x1c8] sm:$0xff] }
 0x108   : > { %1670 = vst.msk [vmem:[#allocation2 + $0x240] sm:$0xff] %vm410_vm2, %v1640_v28  ;;  %v5076_v63 = vld [vmem:[%s5302_s30 + $0xc] sm:$0xfe]  }
 0x109   : > { %3500 = vmatmul.mubr.bf16.gmra.mrb[52].mxu1 %v2865_v18  ;;  %4698 = vmatmul.mubr.msk.bf16.gmra.mrb[52].mxu0 %vm410_vm2, %v2837_v36  ;;  %v5059_v18 = vld [vmem:[%s5262_s19 + $0x8c] ss:$0 sps:$4 sm:$0x11]   ;;  %v2746_v36 = vrot.slane %v5063_v1, 1 }
 0x10a   : > { %3507 = vmatprep.mubr.bf16.mxu1 %v2871_v3  ;;  %4701 = vmatprep.mubr.msk.bf16.mxu0 %vm410_vm2, %v2842_v39  ;;  %v2881_v51 = vld [vmem:[#allocation2 + $0x1f8] sm:$0xff]  ;;  %v2744_v3 = vrot.slane %v5059_v18, 1  ;;  %v1688_v39 = vor.u32 %v1687_v33, %v1683_v31 }
 0x10b   : > { %v2857_v5 = vld [vmem:[#allocation2 + $0x138] sm:$0xff]  ;;  %v2748_v25 = vsel %vm1037_vm1, %v2746_v36, %v2747_v22 }
 0x10c   : > { %v2745_v58 = vsel %vm1037_vm1, %v2743_v2, %v2744_v3  ;;  %2782 = vst.msk [vmem:[#allocation2 + $0x1b0] sm:$0xff] %vm410_vm2, %v2748_v25  ;;  %v2811_v2 = vrot.slane %v5076_v63, 1 }
 0x10d   : > { %2781 = vst.msk [vmem:[#allocation2 + $0x188] sm:$0xff] %vm410_vm2, %v2745_v58 }
 0x10e   : > { %v2880_v6 = vld [vmem:[#allocation2 + $0x1f0] sm:$0xff] }
 0x111   : > { %3508 = vmatmul.mubr.bf16.gmra.mrb[56].mxu1 %v2870_v23  ;;  %4702 = vmatmul.mubr.msk.bf16.gmra.mrb[56].mxu0 %vm410_vm2, %v2847_v43  ;;  %v5065_v23 = vld [vmem:[%s5262_s19 + $0x9c] sm:$0xfe]   ;;  %v2752_v43 = vrot.slane %v5070_v40, 1  ;;  %s241_s19 = sand.u32 1, %s5140_s13  }
 0x112   : > { %3515 = vmatprep.mubr.bf16.mxu1 %v2876_v27  ;;  %4705 = vmatprep.mubr.msk.bf16.mxu0 %vm410_vm2, %v2852_v54  ;;  %v2862_v27 = vld [vmem:[#allocation2 + $0x160] sm:$0xff]  ;;  %v5077_v54 = vld [vmem:[%s5302_s30 + $0x14] ss:$0 sps:$4 sm:$0x11]   ;;  %s3906_s30 = sshll.u32 %s241_s19, 8  ;;  %s6187_s15 = scalar_lea.sflag [#allocation4], %s241_s19 }
 0x113   : > { %v2872_v47 = vld [vmem:[#allocation2 + $0x1b0] sm:$0xff]  ;;  %v2754_v48 = vsel %vm1037_vm1, %v2752_v43, %v2753_v45  ;;  %v2812_v44 = vrot.slane %v5077_v54, 1  ;;  %s6070_s7 = scalar_lea.vmem [#allocation3], %s3906_s30 }
 0x114   : > { %v2867_v34 = vld [vmem:[#allocation2 + $0x188] sm:$0xff]  ;;  %2784 = vst.msk [vmem:[#allocation2 + $0x200] sm:$0xff] %vm410_vm2, %v2754_v48  ;;  %s3798_s9 = sshll.u32 %s6070_s7, 4  ;;  %s6177_s9 = int_to_ptr.vmem [resolvable:$true] %s3798_s9 }
 0x115   : > { %v2813_v55 = vsel %vm1037_vm1, %v2811_v2, %v2812_v44  ;;  %s5078_s21 = scalar_lea.vmem %s6177_s9, 4096  ;;  %p5085_p1 = scmp.lt.s32.totalorder %s6177_s9, %s5083_s27 }
 0x116   : > { %2817 = vst.msk [vmem:[#allocation2 + $0x278] sm:$0xff] %vm410_vm2, %v2813_v55  ;;  %p5079_p12 = scmp.ne.s32.totalorder %s6177_s9, %s5078_s21  ;;  %p5086_p2 = scmp.lt.s32.totalorder %s5084_s28, %s5078_s21 }
 0x117   : > { %v2479_v30 = vpop.permute.xlu0 %2478 }
 0x118   : > { %2507 = vst.msk [vmem:[#allocation2 + $0x220] sm:$0xff] %vm844_vm3, %v2479_v30  ;;  %v1933_v62 = vpop.permute.xlu1 %1932  ;;  %v2749_v30 = vrot.slane %v5065_v23, 1  ;;  %p5080_p13 = pnand %p5079_p12, %p5222_p4  ;;  %p5087_p3 = por %p5086_p2, %p5085_p1 }
 0x119   : > { %3516 = vmatmul.mubr.bf16.gmra.mrb[60].mxu1 %v2875_v20  ;;  %1964 = vst.msk [vmem:[#allocation2 + $0x218] sm:$0xff] %vm844_vm3, %v1933_v62  ;;  %4706 = vmatmul.mubr.msk.bf16.gmra.mrb[60].mxu0 %vm410_vm2, %v2857_v5  ;;  %v1693_v20 = vsel %vm603_vm0, %v1688_v39, %v1692_v4  ;;  %v2809_v62 = vrot.slane %v5075_v56, 1 }
 0x11a   : > { %3523 = vmatprep.mubr.bf16.mxu1 %v2881_v51  ;;  %4709 = vmatprep.mubr.msk.bf16.mxu0 %vm410_vm2, %v2862_v27  ;;  %v2751_v37 = vsel %vm1037_vm1, %v2749_v30, %v2750_v32  ;;  %1695 = vst.msk [vmem:[#allocation2 + $0x268] sm:$0xff] %vm410_vm2, %v1693_v20  ;;  %v2756_v51 = vrot.slane %v5073_v46, 1  ;;  %p5081_p0 = pneg %p5080_p13 }
 0x11b   : > { %2783 = vst.msk [vmem:[#allocation2 + $0x1d8] sm:$0xff] %vm410_vm2, %v2751_v37  ;;  %v2810_v0 = vsel %vm1037_vm1, %v2808_v60, %v2809_v62  ;;  %v2882_v3 = vld [vmem:[#allocation2 + $0x200] sm:$0xff] }
 0x11c   : > { %v2757_v29 = vsel %vm1037_vm1, %v2755_v49, %v2756_v51  ;;  %2816 = vst.msk [vmem:[#allocation2 + $0x250] sm:$0xff] %vm410_vm2, %v2810_v0  ;;  %p5088_p5 = pnand %p5087_p3, %p5081_p0 }
 0x11d   : > { %2785 = vst.msk [vmem:[#allocation2 + $0x228] sm:$0xff] %vm410_vm2, %v2757_v29 }
 0x11f   : > { %v2886_v19 = vld [vmem:[#allocation2 + $0x220] sm:$0xff] }
 0x120   : > { %v2885_v38 = vld [vmem:[#allocation2 + $0x218] sm:$0xff] }
 0x121   : > { %3524 = vmatmul.mubr.bf16.gmra.mrb[64].mxu1 %v2880_v6  ;;  %4710 = vmatmul.mubr.msk.bf16.gmra.mrb[64].mxu0 %vm410_vm2, %v2867_v34 }
 0x122   : > { %3531 = vmatprep.mubr.bf16.mxu1 %v2886_v19  ;;  %4713 = vmatprep.mubr.msk.bf16.mxu0 %vm410_vm2, %v2872_v47  ;;  %v2877_v57 = vld [vmem:[#allocation2 + $0x1d8] sm:$0xff] }
 0x123   : > { %v2555_v7 = vpop.permute.xlu0 %2554  ;;  %v2892_v58 = vld [vmem:[#allocation2 + $0x250] sm:$0xff] }
 0x124   : > { %2560 = vst.msk [vmem:[#allocation2 + $0x248] sm:$0xff] %vm844_vm3, %v2555_v7  ;;  %v2887_v5 = vld [vmem:[#allocation2 + $0x228] sm:$0xff]  ;;  %v2897_v7 = vld [vmem:[#allocation2 + $0x278] sm:$0xff] }
 0x126   : > { %v1935_v24 = vpop.permute.xlu1 %1934 }
 0x127   : > { %1965 = vst.msk [vmem:[#allocation2 + $0x240] sm:$0xff] %vm844_vm3, %v1935_v24 }
 0x129   : > { %3532 = vmatmul.mubr.bf16.gmra.mrb[68].mxu1 %v2885_v38  ;;  %4714 = vmatmul.mubr.msk.bf16.gmra.mrb[68].mxu0 %vm410_vm2, %v2877_v57 }
 0x12a   : > { %4717 = vmatprep.mubr.msk.bf16.mxu0 %vm410_vm2, %v2882_v3 }
 0x12b   : > { %v2891_v41 = vld [vmem:[#allocation2 + $0x248] sm:$0xff] }
 0x12c   : > { %3539 = vmatprep.mubr.bf16.mxu1 %v2891_v41  ;;  %v1981_v18 = vpop.permute.xlu1 %1980 }
 0x12d   : > { %1983 = vst.msk [vmem:[#allocation2 + $0x268] sm:$0xff] %vm844_vm3, %v1981_v18 }
 0x12e   : > { %v2890_v52 = vld [vmem:[#allocation2 + $0x240] sm:$0xff]  ;;  %v2557_v59 = vpop.permute.xlu0 %2556 }
 0x12f   : > { %2561 = vst.msk [vmem:[#allocation2 + $0x270] sm:$0xff] %vm844_vm3, %v2557_v59 }
 0x131   : > { %3540 = vmatmul.mubr.bf16.gmra.mrb[72].mxu1 %v2890_v52  ;;  %4718 = vmatmul.mubr.msk.bf16.gmra.mrb[72].mxu0 %vm410_vm2, %v2887_v5 }
 0x132   : > { %4721 = vmatprep.mubr.msk.bf16.mxu0 %vm410_vm2, %v2892_v58 }
 0x134   : > { %v2895_v6 = vld [vmem:[#allocation2 + $0x268] sm:$0xff] }
 0x136   : > { %v2896_v61 = vld [vmem:[#allocation2 + $0x270] sm:$0xff] }
 0x137   : > { %3547 = vmatprep.mubr.bf16.mxu1 %v2896_v61 }
 0x139   : > { %3548 = vmatmul.mubr.bf16.gmra.mrb[76].mxu1 %v2895_v6  ;;  %4722 = vmatmul.mubr.msk.bf16.gmra.mrb[76].mxu0 %vm410_vm2, %v2897_v7 }
 0x172   : > { %v4529_v8 = vpop.f32.mrb[0].mxu1 }
 0x173   : > { %v4457_v10 = vpop.f32.mrb[0].mxu0  ;;  %v4530_v11 = vpop.f32.mrb[1].mxu1 }
 0x174   : > { %v5993_v12 = vadd.f32 %v4530_v11, %v4529_v8  ;;  %v4458_v50 = vpop.f32.mrb[1].mxu0  ;;  %v4532_v14 = vpop.f32.mrb[2].mxu1 }
 0x175   : > { %v4459_v1 = vadd.f32 %v4458_v50, %v4457_v10  ;;  %v4460_v15 = vpop.f32.mrb[2].mxu0  ;;  %v4533_v17 = vpop.f32.mrb[3].mxu1 }
 0x176   : > { %v5995_v19 = vadd.f32 %v4533_v17, %v4532_v14  ;;  %v4461_v21 = vpop.f32.mrb[3].mxu0 }
 0x177   : > { %v4462_v36 = vadd.f32 %v4461_v21, %v4460_v15 }
 0x17a   : > { %v4535_v22 = vpop.f32.mrb[4].mxu1 }
 0x17b   : > { %v4463_v23 = vpop.f32.mrb[4].mxu0  ;;  %v4536_v24 = vpop.f32.mrb[5].mxu1 }
 0x17c   : > { %v5997_v9 = vadd.f32 %v4536_v24, %v4535_v22  ;;  %v4464_v26 = vpop.f32.mrb[5].mxu0  ;;  %v4538_v27 = vpop.f32.mrb[6].mxu1 }
 0x17d   : > { %v4465_v28 = vadd.f32 %v4464_v26, %v4463_v23  ;;  %v4466_v25 = vpop.f32.mrb[6].mxu0  ;;  %v4539_v30 = vpop.f32.mrb[7].mxu1 }
 0x17e   : > { %v5999_v31 = vadd.f32 %v4539_v30, %v4538_v27  ;;  %v4467_v32 = vpop.f32.mrb[7].mxu0 }
 0x17f   : > { %v4468_v33 = vadd.f32 %v4467_v32, %v4466_v25 }
 0x182   : > { %v4541_v34 = vpop.f32.mrb[8].mxu1 }
 0x183   : > { %v4542_v35 = vpop.f32.mrb[9].mxu1  ;;  %v4469_v37 = vpop.f32.mrb[8].mxu0 }
 0x184   : > { %v6001_v38 = vadd.f32 %v4542_v35, %v4541_v34  ;;  %v4544_v39 = vpop.f32.mrb[10].mxu1  ;;  %v4470_v16 = vpop.f32.mrb[9].mxu0 }
 0x185   : > { %v4545_v40 = vpop.f32.mrb[11].mxu1  ;;  %v4471_v41 = vadd.f32 %v4470_v16, %v4469_v37  ;;  %v4472_v42 = vpop.f32.mrb[10].mxu0 }
 0x186   : > { %v6003_v4 = vadd.f32 %v4545_v40, %v4544_v39  ;;  %v4473_v43 = vpop.f32.mrb[11].mxu0 }
 0x187   : > { %v4474_v45 = vadd.f32 %v4473_v43, %v4472_v42 }
 0x18a   : > { %v4547_v13 = vpop.f32.mrb[12].mxu1 }
 0x18b   : > { %v4475_v46 = vpop.f32.mrb[12].mxu0  ;;  %v4548_v47 = vpop.f32.mrb[13].mxu1 }
 0x18c   : > { %v6005_v20 = vadd.f32 %v4548_v47, %v4547_v13  ;;  %v4476_v48 = vpop.f32.mrb[13].mxu0  ;;  %v4550_v49 = vpop.f32.mrb[14].mxu1 }
 0x18d   : > { %v4477_v51 = vadd.f32 %v4476_v48, %v4475_v46  ;;  %v4478_v52 = vpop.f32.mrb[14].mxu0  ;;  %v4551_v53 = vpop.f32.mrb[15].mxu1 }
 0x18e   : > { %v6007_v56 = vadd.f32 %v4551_v53, %v4550_v49  ;;  %v4479_v57 = vpop.f32.mrb[15].mxu0 }
 0x18f   : > { %v4480_v59 = vadd.f32 %v4479_v57, %v4478_v52 }
 0x192   : > { %v4569_v29 = vpop.f32.mrb[16].mxu1 }
 0x193   : > { %v4481_v60 = vpop.f32.mrb[16].mxu0  ;;  %v4570_v62 = vpop.f32.mrb[17].mxu1 }
 0x194   : > { %v4482_v63 = vpop.f32.mrb[17].mxu0  ;;  %v4571_v18 = vadd.f32 %v4570_v62, %v4569_v29  ;;  %v4572_v0 = vpop.f32.mrb[18].mxu1 }
 0x195   : > { %v4483_v54 = vadd.f32 %v4482_v63, %v4481_v60  ;;  %v4484_v2 = vpop.f32.mrb[18].mxu0  ;;  %v4573_v44 = vpop.f32.mrb[19].mxu1 }
 0x196   : > { %v4485_v3 = vpop.f32.mrb[19].mxu0  ;;  %v4574_v55 = vadd.f32 %v4573_v44, %v4572_v0  ;;  %v6009_v61 = vadd.f32 %v4571_v18, %v4459_v1 }
 0x197   : > { %v4486_v5 = vadd.f32 %v4485_v3, %v4484_v2 }
 0x198   : > { %v6011_v6 = vadd.f32 %v4574_v55, %v4462_v36 }
 0x19a   : > { %v4575_v58 = vpop.f32.mrb[20].mxu1 }
 0x19b   : > { %v4576_v7 = vpop.f32.mrb[21].mxu1  ;;  %v4487_v50 = vpop.f32.mrb[20].mxu0 }
 0x19c   : > { %v4577_v8 = vadd.f32 %v4576_v7, %v4575_v58  ;;  %v4578_v10 = vpop.f32.mrb[22].mxu1  ;;  %v4488_v17 = vpop.f32.mrb[21].mxu0 }
 0x19d   : > { %v4579_v11 = vpop.f32.mrb[23].mxu1  ;;  %v4489_v21 = vadd.f32 %v4488_v17, %v4487_v50  ;;  %v4490_v22 = vpop.f32.mrb[22].mxu0 }
 0x19e   : > { %v4580_v14 = vadd.f32 %v4579_v11, %v4578_v10  ;;  %v6013_v15 = vadd.f32 %v4577_v8, %v4465_v28  ;;  %v4491_v24 = vpop.f32.mrb[23].mxu0 }
 0x19f   : > { %v4492_v26 = vadd.f32 %v4491_v24, %v4490_v22 }
 0x1a0   : > { %v6015_v23 = vadd.f32 %v4580_v14, %v4468_v33 }
 0x1a2   : > { %v4581_v1 = vpop.f32.mrb[24].mxu1 }
 0x1a3   : > { %v4493_v27 = vpop.f32.mrb[24].mxu0  ;;  %v4582_v36 = vpop.f32.mrb[25].mxu1 }
 0x1a4   : > { %v4583_v25 = vadd.f32 %v4582_v36, %v4581_v1  ;;  %v4494_v30 = vpop.f32.mrb[25].mxu0  ;;  %v4584_v32 = vpop.f32.mrb[26].mxu1 }
 0x1a5   : > { %v4495_v34 = vadd.f32 %v4494_v30, %v4493_v27  ;;  %v4496_v35 = vpop.f32.mrb[26].mxu0  ;;  %v4585_v37 = vpop.f32.mrb[27].mxu1 }
 0x1a6   : > { %v4586_v39 = vadd.f32 %v4585_v37, %v4584_v32  ;;  %v4497_v16 = vpop.f32.mrb[27].mxu0  ;;  %v6017_v28 = vadd.f32 %v4583_v25, %v4471_v41 }
 0x1a7   : > { %v4498_v40 = vadd.f32 %v4497_v16, %v4496_v35 }
 0x1a8   : > { %v6019_v42 = vadd.f32 %v4586_v39, %v4474_v45 }
 0x1ac   : > { %v4587_v33 = vpop.f32.mrb[28].mxu1  ;;  %v4499_v43 = vpop.f32.mrb[28].mxu0 }
 0x1ad   : > { %v4588_v13 = vpop.f32.mrb[29].mxu1  ;;  %v4500_v47 = vpop.f32.mrb[29].mxu0 }
 0x1ae   : > { %v4589_v46 = vadd.f32 %v4588_v13, %v4587_v33  ;;  %v4590_v48 = vpop.f32.mrb[30].mxu1  ;;  %v4501_v49 = vadd.f32 %v4500_v47, %v4499_v43  ;;  %v4502_v52 = vpop.f32.mrb[30].mxu0 }
 0x1af   : > { %v4591_v53 = vpop.f32.mrb[31].mxu1  ;;  %v4503_v29 = vpop.f32.mrb[31].mxu0 }
 0x1b0   : > { %v4592_v57 = vadd.f32 %v4591_v53, %v4590_v48  ;;  %v6021_v60 = vadd.f32 %v4589_v46, %v4477_v51  ;;  %v4504_v62 = vadd.f32 %v4503_v29, %v4502_v52 }
 0x1b2   : > { %v6023_v63 = vadd.f32 %v4592_v57, %v4480_v59 }
 0x1b4   : > { %v4593_v41 = vpop.f32.mrb[32].mxu1  ;;  %v4505_v18 = vpop.f32.mrb[32].mxu0 }
 0x1b5   : > { %v4594_v45 = vpop.f32.mrb[33].mxu1  ;;  %v4506_v2 = vpop.f32.mrb[33].mxu0 }
 0x1b6   : > { %v4595_v0 = vadd.f32 %v4594_v45, %v4593_v41  ;;  %v4596_v44 = vpop.f32.mrb[34].mxu1  ;;  %v6025_v3 = vadd.f32 %v4506_v2, %v4505_v18  ;;  %v4508_v55 = vpop.f32.mrb[34].mxu0 }
 0x1b7   : > { %v4597_v58 = vpop.f32.mrb[35].mxu1  ;;  %v4509_v8 = vpop.f32.mrb[35].mxu0 }
 0x1b8   : > { %v4598_v7 = vadd.f32 %v4597_v58, %v4596_v44  ;;  %v6027_v10 = vadd.f32 %v4595_v0, %v4483_v54  ;;  %v6029_v11 = vadd.f32 %v4509_v8, %v4508_v55 }
 0x1ba   : > { %v6031_v51 = vadd.f32 %v4598_v7, %v4486_v5 }
 0x1bc   : > { %v4599_v59 = vpop.f32.mrb[36].mxu1  ;;  %v4511_v50 = vpop.f32.mrb[36].mxu0 }
 0x1bd   : > { %v4600_v14 = vpop.f32.mrb[37].mxu1  ;;  %v4512_v22 = vpop.f32.mrb[37].mxu0 }
 0x1be   : > { %v4601_v17 = vadd.f32 %v4600_v14, %v4599_v59  ;;  %v4602_v24 = vpop.f32.mrb[38].mxu1  ;;  %v6033_v1 = vadd.f32 %v4512_v22, %v4511_v50  ;;  %v4514_v27 = vpop.f32.mrb[38].mxu0 }
 0x1bf   : > { %v4603_v36 = vpop.f32.mrb[39].mxu1  ;;  %v4515_v30 = vpop.f32.mrb[39].mxu0 }
 0x1c0   : > { %v4604_v25 = vadd.f32 %v4603_v36, %v4602_v24  ;;  %v6035_v32 = vadd.f32 %v4601_v17, %v4489_v21  ;;  %v6037_v54 = vadd.f32 %v4515_v30, %v4514_v27 }
 0x1c2   : > { %v6039_v35 = vadd.f32 %v4604_v25, %v4492_v26 }
 0x1c4   : > { %v4605_v5 = vpop.f32.mrb[40].mxu1  ;;  %v4517_v37 = vpop.f32.mrb[40].mxu0 }
 0x1c5   : > { %v4606_v39 = vpop.f32.mrb[41].mxu1  ;;  %v4518_v33 = vpop.f32.mrb[41].mxu0 }
 0x1c6   : > { %v4607_v16 = vadd.f32 %v4606_v39, %v4605_v5  ;;  %v4608_v43 = vpop.f32.mrb[42].mxu1  ;;  %v6041_v13 = vadd.f32 %v4518_v33, %v4517_v37  ;;  %v4520_v46 = vpop.f32.mrb[42].mxu0 }
 0x1c7   : > { %v4609_v47 = vpop.f32.mrb[43].mxu1  ;;  %v4521_v52 = vpop.f32.mrb[43].mxu0 }
 0x1c8   : > { %v4610_v48 = vadd.f32 %v4609_v47, %v4608_v43  ;;  %v6043_v53 = vadd.f32 %v4607_v16, %v4495_v34  ;;  %v6045_v21 = vadd.f32 %v4521_v52, %v4520_v46 }
 0x1ca   : > { %v6047_v57 = vadd.f32 %v4610_v48, %v4498_v40 }
 0x1cc   : > { %v4611_v26 = vpop.f32.mrb[44].mxu1  ;;  %v4523_v29 = vpop.f32.mrb[44].mxu0 }
 0x1cd   : > { %v4612_v41 = vpop.f32.mrb[45].mxu1  ;;  %v4524_v45 = vpop.f32.mrb[45].mxu0 }
 0x1ce   : > { %v4613_v18 = vadd.f32 %v4612_v41, %v4611_v26  ;;  %v4614_v0 = vpop.f32.mrb[46].mxu1  ;;  %v6049_v2 = vadd.f32 %v4524_v45, %v4523_v29  ;;  %v4526_v44 = vpop.f32.mrb[46].mxu0 }
 0x1cf   : > { %v4615_v55 = vpop.f32.mrb[47].mxu1  ;;  %v4527_v7 = vpop.f32.mrb[47].mxu0 }
 0x1d0   : > { %v4616_v58 = vadd.f32 %v4615_v55, %v4614_v0  ;;  %v6051_v34 = vadd.f32 %v4613_v18, %v4501_v49  ;;  %v6053_v8 = vadd.f32 %v4527_v7, %v4526_v44 }
 0x1d2   : > { %v6056_v40 = vadd.f32 %v4616_v58, %v4504_v62 }
 0x1d4   : > { %v4617_v59 = vpop.f32.mrb[48].mxu1  ;;  %v4695_v17 = vpop.f32.mrb[48].mxu0 }
 0x1d5   : > { %v4618_v50 = vpop.f32.mrb[49].mxu1  ;;  %v3599_v24 = vadd.f32 %v4695_v17, %v6013_v15  ;;  %v3590_v27 = vpop.f32.mrb[49].mxu0 }
 0x1d6   : > { %v4619_v14 = vadd.f32 %v4618_v50, %v4617_v59  ;;  %v4620_v22 = vpop.f32.mrb[50].mxu1  ;;  %v3591_v25 = vadd.f32 %v3590_v27, %v6009_v61  ;;  %v4696_v30 = vpop.f32.mrb[50].mxu0 }
 0x1d7   : > { %v4621_v36 = vpop.f32.mrb[51].mxu1  ;;  %v3719_v62 = vmax.f32 %v3599_v24, 0.0  ;;  %v3602_v37 = vadd.f32 %v4696_v30, %v6015_v23  ;;  %v3593_v39 = vpop.f32.mrb[51].mxu0 }
 0x1d8   : > { %v4622_v49 = vadd.f32 %v4621_v36, %v4620_v22  ;;  %v6063_v5 = vadd.f32 %v4619_v14, %v6025_v3  ;;  %v3717_v16 = vmax.f32 %v3591_v25, 0.0  ;;  %v3594_v33 = vadd.f32 %v3593_v39, %v6011_v6 }
 0x1d9   : > { %3751 = vst.msk [vmem:[%s6070_s7 + $0x10] sm:$0xff] %vm410_vm2, %v3719_v62  ;;  %v3720_v61 = vmax.f32 %v3602_v37, 0.0 }
 0x1da   : > { %v6068_v43 = vadd.f32 %v4622_v49, %v6029_v11  ;;  %3749 = vst.msk [vmem:[%s6070_s7] sm:$0xff] %vm410_vm2, %v3717_v16  ;;  %v3718_v15 = vmax.f32 %v3594_v33, 0.0 }
 0x1db   : > { %3752 = vst.msk [vmem:[%s6070_s7 + $0x18] sm:$0xff] %vm410_vm2, %v3720_v61 }
 0x1dc   : > { %v4623_v23 = vpop.f32.mrb[52].mxu1  ;;  %3750 = vst.msk [vmem:[%s6070_s7 + $0x8] sm:$0xff] %vm410_vm2, %v3718_v15  ;;  %v4699_v46 = vpop.f32.mrb[52].mxu0 }
 0x1dd   : > { %v4624_v3 = vpop.f32.mrb[53].mxu1  ;;  %v3615_v48 = vadd.f32 %v4699_v46, %v6021_v60  ;;  %v3606_v52 = vpop.f32.mrb[53].mxu0 }
 0x1de   : > { %v4625_v6 = vadd.f32 %v4624_v3, %v4623_v23  ;;  %v4626_v11 = vpop.f32.mrb[54].mxu1  ;;  %v3607_v41 = vadd.f32 %v3606_v52, %v6017_v28  ;;  %v4700_v18 = vpop.f32.mrb[54].mxu0 }
 0x1df   : > { %v4627_v47 = vpop.f32.mrb[55].mxu1  ;;  %v3723_v45 = vmax.f32 %v3615_v48, 0.0  ;;  %v3618_v0 = vadd.f32 %v4700_v18, %v6023_v63  ;;  %v3609_v44 = vpop.f32.mrb[55].mxu0 }
 0x1e0   : > { %v4628_v26 = vadd.f32 %v4627_v47, %v4626_v11  ;;  %v6082_v29 = vadd.f32 %v4625_v6, %v6033_v1  ;;  %v3721_v58 = vmax.f32 %v3607_v41, 0.0  ;;  %v3610_v60 = vadd.f32 %v3609_v44, %v6019_v42 }
 0x1e1   : > { %3755 = vst.msk [vmem:[%s6070_s7 + $0x30] sm:$0xff] %vm410_vm2, %v3723_v45  ;;  %v3724_v7 = vmax.f32 %v3618_v0, 0.0 }
 0x1e2   : > { %v6087_v55 = vadd.f32 %v4628_v26, %v6037_v54  ;;  %3753 = vst.msk [vmem:[%s6070_s7 + $0x20] sm:$0xff] %vm410_vm2, %v3721_v58  ;;  %v3722_v1 = vmax.f32 %v3610_v60, 0.0 }
 0x1e3   : > { %3756 = vst.msk [vmem:[%s6070_s7 + $0x38] sm:$0xff] %vm410_vm2, %v3724_v7 }
 0x1e4   : > { %v4629_v59 = vpop.f32.mrb[56].mxu1  ;;  %3754 = vst.msk [vmem:[%s6070_s7 + $0x28] sm:$0xff] %vm410_vm2, %v3722_v1  ;;  %v4703_v63 = vpop.f32.mrb[56].mxu0 }
 0x1e5   : > { %v4630_v28 = vpop.f32.mrb[57].mxu1  ;;  %v3631_v42 = vadd.f32 %v4703_v63, %v6035_v32  ;;  %v3622_v17 = vpop.f32.mrb[57].mxu0 }
 0x1e6   : > { %v4631_v50 = vadd.f32 %v4630_v28, %v4629_v59  ;;  %v4632_v14 = vpop.f32.mrb[58].mxu1  ;;  %v3623_v27 = vadd.f32 %v3622_v17, %v6027_v10  ;;  %v4704_v36 = vpop.f32.mrb[58].mxu0 }
 0x1e7   : > { %v4633_v54 = vpop.f32.mrb[59].mxu1  ;;  %v3727_v25 = vmax.f32 %v3631_v42, 0.0  ;;  %v3634_v49 = vadd.f32 %v4704_v36, %v6039_v35  ;;  %v3625_v30 = vpop.f32.mrb[59].mxu0 }
 0x1e8   : > { %v4634_v22 = vadd.f32 %v4633_v54, %v4632_v14  ;;  %v6100_v24 = vadd.f32 %v4631_v50, %v6041_v13  ;;  %v3725_v37 = vmax.f32 %v3623_v27, 0.0  ;;  %v3626_v32 = vadd.f32 %v3625_v30, %v6031_v51 }
 0x1e9   : > { %3759 = vst.msk [vmem:[%s6070_s7 + $0x50] sm:$0xff] %vm410_vm2, %v3727_v25  ;;  %v3728_v39 = vmax.f32 %v3634_v49, 0.0 }
 0x1ea   : > { %v6105_v62 = vadd.f32 %v4634_v22, %v6045_v21  ;;  %3757 = vst.msk [vmem:[%s6070_s7 + $0x40] sm:$0xff] %vm410_vm2, %v3725_v37  ;;  %v3726_v13 = vmax.f32 %v3626_v32, 0.0 }
 0x1eb   : > { %3760 = vst.msk [vmem:[%s6070_s7 + $0x58] sm:$0xff] %vm410_vm2, %v3728_v39 }
 0x1ec   : > { %v4635_v16 = vpop.f32.mrb[60].mxu1  ;;  %3758 = vst.msk [vmem:[%s6070_s7 + $0x48] sm:$0xff] %vm410_vm2, %v3726_v13  ;;  %v4707_v35 = vpop.f32.mrb[60].mxu0 }
 0x1ed   : > { %v4636_v10 = vpop.f32.mrb[61].mxu1  ;;  %v3647_v51 = vadd.f32 %v4707_v35, %v6051_v34  ;;  %v3638_v15 = vpop.f32.mrb[61].mxu0 }
 0x1ee   : > { %v4637_v33 = vadd.f32 %v4636_v10, %v4635_v16  ;;  %v4638_v61 = vpop.f32.mrb[62].mxu1  ;;  %v3639_v6 = vadd.f32 %v3638_v15, %v6043_v53  ;;  %v4708_v11 = vpop.f32.mrb[62].mxu0 }
 0x1ef   : > { %v4639_v21 = vpop.f32.mrb[63].mxu1  ;;  %v3731_v46 = vmax.f32 %v3647_v51, 0.0  ;;  %v3650_v47 = vadd.f32 %v4708_v11, %v6056_v40  ;;  %v3641_v48 = vpop.f32.mrb[63].mxu0 }
 0x1f0   : > { %v4640_v23 = vadd.f32 %v4639_v21, %v4638_v61  ;;  %v3518_v3 = vadd.f32 %v4637_v33, %v6049_v2  ;;  %v3729_v26 = vmax.f32 %v3639_v6, 0.0  ;;  %v3642_v41 = vadd.f32 %v3641_v48, %v6047_v57 }
 0x1f1   : > { %3763 = vst.msk [vmem:[%s6070_s7 + $0x70] sm:$0xff] %vm410_vm2, %v3731_v46  ;;  %v3732_v34 = vmax.f32 %v3650_v47, 0.0 }
 0x1f2   : > { %v3521_v52 = vadd.f32 %v4640_v23, %v6053_v8  ;;  %3761 = vst.msk [vmem:[%s6070_s7 + $0x60] sm:$0xff] %vm410_vm2, %v3729_v26  ;;  %v3730_v2 = vmax.f32 %v3642_v41, 0.0 }
 0x1f3   : > { %3764 = vst.msk [vmem:[%s6070_s7 + $0x78] sm:$0xff] %vm410_vm2, %v3732_v34 }
 0x1f4   : > { %v4641_v18 = vpop.f32.mrb[64].mxu1  ;;  %3762 = vst.msk [vmem:[%s6070_s7 + $0x68] sm:$0xff] %vm410_vm2, %v3730_v2  ;;  %v4711_v8 = vpop.f32.mrb[64].mxu0 }
 0x1f5   : > { %v4642_v45 = vpop.f32.mrb[65].mxu1  ;;  %v3663_v58 = vadd.f32 %v4711_v8, %v6082_v29  ;;  %v3654_v60 = vpop.f32.mrb[65].mxu0 }
 0x1f6   : > { %v4643_v53 = vadd.f32 %v4642_v45, %v4641_v18  ;;  %v4644_v0 = vpop.f32.mrb[66].mxu1  ;;  %v3655_v7 = vadd.f32 %v3654_v60, %v6063_v5  ;;  %v4712_v59 = vpop.f32.mrb[66].mxu0 }
 0x1f7   : > { %v4645_v40 = vpop.f32.mrb[67].mxu1  ;;  %v3735_v28 = vmax.f32 %v3663_v58, 0.0  ;;  %v3666_v50 = vadd.f32 %v4712_v59, %v6087_v55  ;;  %v3657_v14 = vpop.f32.mrb[67].mxu0 }
 0x1f8   : > { %v4646_v44 = vadd.f32 %v4645_v40, %v4644_v0  ;;  %v3526_v57 = vadd.f32 %v4643_v53, %v5993_v12  ;;  %v3733_v63 = vmax.f32 %v3655_v7, 0.0  ;;  %v3658_v54 = vadd.f32 %v3657_v14, %v6068_v43 }
 0x1f9   : > { %3767 = vst.msk [vmem:[%s6070_s7 + $0x90] sm:$0xff] %vm410_vm2, %v3735_v28  ;;  %v3736_v12 = vmax.f32 %v3666_v50, 0.0 }
 0x1fa   : > { %v3529_v1 = vadd.f32 %v4646_v44, %v5995_v19  ;;  %3765 = vst.msk [vmem:[%s6070_s7 + $0x80] sm:$0xff] %vm410_vm2, %v3733_v63  ;;  %v3734_v5 = vmax.f32 %v3658_v54, 0.0 }
 0x1fb   : > { %3768 = vst.msk [vmem:[%s6070_s7 + $0x98] sm:$0xff] %vm410_vm2, %v3736_v12 }
 0x1fc   : > { %v4647_v42 = vpop.f32.mrb[68].mxu1  ;;  %3766 = vst.msk [vmem:[%s6070_s7 + $0x88] sm:$0xff] %vm410_vm2, %v3734_v5  ;;  %v4715_v43 = vpop.f32.mrb[68].mxu0 }
 0x1fd   : > { %v4648_v29 = vpop.f32.mrb[69].mxu1  ;;  %v3679_v36 = vadd.f32 %v4715_v43, %v3518_v3  ;;  %v3670_v25 = vpop.f32.mrb[69].mxu0 }
 0x1fe   : > { %v4649_v17 = vadd.f32 %v4648_v29, %v4647_v42  ;;  %v4650_v22 = vpop.f32.mrb[70].mxu1  ;;  %v3671_v30 = vadd.f32 %v3670_v25, %v6100_v24  ;;  %v4716_v37 = vpop.f32.mrb[70].mxu0 }
 0x1ff   : > { %v4651_v19 = vpop.f32.mrb[71].mxu1  ;;  %v3739_v32 = vmax.f32 %v3679_v36, 0.0  ;;  %v3682_v39 = vadd.f32 %v4716_v37, %v3521_v52  ;;  %v3673_v16 = vpop.f32.mrb[71].mxu0 }
 0x200   : > { %v4652_v55 = vadd.f32 %v4651_v19, %v4650_v22  ;;  %v3534_v27 = vadd.f32 %v4649_v17, %v5997_v9  ;;  %v3737_v10 = vmax.f32 %v3671_v30, 0.0  ;;  %v3674_v33 = vadd.f32 %v3673_v16, %v6105_v62 }
 0x201   : > { %3771 = vst.msk [vmem:[%s6070_s7 + $0xb0] sm:$0xff] %vm410_vm2, %v3739_v32  ;;  %v3740_v9 = vmax.f32 %v3682_v39, 0.0 }
 0x202   : > { %v3537_v49 = vadd.f32 %v4652_v55, %v5999_v31  ;;  %3769 = vst.msk [vmem:[%s6070_s7 + $0xa0] sm:$0xff] %vm410_vm2, %v3737_v10  ;;  %v3738_v31 = vmax.f32 %v3674_v33, 0.0 }
 0x203   : > { %3772 = vst.msk [vmem:[%s6070_s7 + $0xb8] sm:$0xff] %vm410_vm2, %v3740_v9 }
 0x204   : > { %v4653_v13 = vpop.f32.mrb[72].mxu1  ;;  %3770 = vst.msk [vmem:[%s6070_s7 + $0xa8] sm:$0xff] %vm410_vm2, %v3738_v31  ;;  %v4719_v23 = vpop.f32.mrb[72].mxu0 }
 0x205   : > { %v4654_v61 = vpop.f32.mrb[73].mxu1  ;;  %v3695_v62 = vadd.f32 %v4719_v23, %v3534_v27  ;;  %v3686_v3 = vpop.f32.mrb[73].mxu0 }
 0x206   : > { %v4655_v35 = vadd.f32 %v4654_v61, %v4653_v13  ;;  %v4656_v21 = vpop.f32.mrb[74].mxu1  ;;  %v3687_v11 = vadd.f32 %v3686_v3, %v3526_v57  ;;  %v4720_v46 = vpop.f32.mrb[74].mxu0 }
 0x207   : > { %v4657_v24 = vpop.f32.mrb[75].mxu1  ;;  %v3743_v47 = vmax.f32 %v3695_v62, 0.0  ;;  %v3698_v48 = vadd.f32 %v4720_v46, %v3537_v49  ;;  %v3689_v52 = vpop.f32.mrb[75].mxu0 }
 0x208   : > { %v4658_v51 = vadd.f32 %v4657_v24, %v4656_v21  ;;  %v3542_v15 = vadd.f32 %v4655_v35, %v6001_v38  ;;  %v3741_v41 = vmax.f32 %v3687_v11, 0.0  ;;  %v3690_v34 = vadd.f32 %v3689_v52, %v3529_v1 }
 0x209   : > { %3775 = vst.msk [vmem:[%s6070_s7 + $0xd0] sm:$0xff] %vm410_vm2, %v3743_v47  ;;  %v3744_v38 = vmax.f32 %v3698_v48, 0.0 }
 0x20a   : > { %v3545_v6 = vadd.f32 %v4658_v51, %v6003_v4  ;;  %3773 = vst.msk [vmem:[%s6070_s7 + $0xc0] sm:$0xff] %vm410_vm2, %v3741_v41  ;;  %v3742_v4 = vmax.f32 %v3690_v34, 0.0 }
 0x20b   : > { %3776 = vst.msk [vmem:[%s6070_s7 + $0xd8] sm:$0xff] %vm410_vm2, %v3744_v38 }
 0x20c   : > { %v4659_v26 = vpop.f32.mrb[76].mxu1  ;;  %3774 = vst.msk [vmem:[%s6070_s7 + $0xc8] sm:$0xff] %vm410_vm2, %v3742_v4  ;;  %v4723_v8 = vpop.f32.mrb[76].mxu0 }
 0x20d   : > { %v4660_v18 = vpop.f32.mrb[77].mxu1  ;;  %v3702_v57 = vpop.f32.mrb[77].mxu0 }
 0x20e   : > { %v4661_v2 = vadd.f32 %v4660_v18, %v4659_v26  ;;  %v4662_v45 = vpop.f32.mrb[78].mxu1  ;;  %v3703_v60 = vadd.f32 %v3702_v57, %v3542_v15  ;;  %v4724_v7 = vpop.f32.mrb[78].mxu0 }
 0x20f   : > { %v4663_v53 = vpop.f32.mrb[79].mxu1  ;;  %v3705_v1 = vpop.f32.mrb[79].mxu0 }
 0x210   : > { %v3550_v0 = vadd.f32 %v4661_v2, %v6005_v20  ;;  %v4664_v40 = vadd.f32 %v4663_v53, %v4662_v45  ;;  %v3745_v28 = vmax.f32 %v3703_v60, 0.0  ;;  %v3706_v50 = vadd.f32 %v3705_v1, %v3545_v6 }
 0x212   : > { %v3711_v44 = vadd.f32 %v4723_v8, %v3550_v0  ;;  %v3553_v58 = vadd.f32 %v4664_v40, %v6007_v56  ;;  %3777 = vst.msk [vmem:[%s6070_s7 + $0xe0] sm:$0xff] %vm410_vm2, %v3745_v28  ;;  %v3746_v56 = vmax.f32 %v3706_v50, 0.0 }
 0x214   : > { %v3747_v59 = vmax.f32 %v3711_v44, 0.0  ;;  %v3714_v20 = vadd.f32 %v4724_v7, %v3553_v58  ;;  %3778 = vst.msk [vmem:[%s6070_s7 + $0xe8] sm:$0xff] %vm410_vm2, %v3746_v56 }
 0x216   : > { %3779 = vst.msk [vmem:[%s6070_s7 + $0xf0] sm:$0xff] %vm410_vm2, %v3747_v59  ;;  %v3748_v14 = vmax.f32 %v3714_v20, 0.0 }
 0x218   : > { %3780 = vst.msk [vmem:[%s6070_s7 + $0xf8] sm:$0xff] %vm410_vm2, %v3748_v14 }
 0x219   : > { %5091 = shalt.err (!%p5088_p5)
}
 0x21a   : > { %s5092_s29 = scalar_lea.hbm %s6175_s18, 4096  ;;  %s5096_s5 = scalar_lea.hbm %s6236_s3, 8192 }
 0x21b   : > { %p5093_p6 = scmp.ne.s32.totalorder %s6175_s18, %s5092_s29  ;;  %p5097_p10 = scmp.lt.u32.totalorder %s6175_s18, %s6236_s3 }
 0x21c   : > { %p5098_p11 = scmp.lt.u32.totalorder %s5096_s5, %s5092_s29  ;;  %p5100_p13 = scmp.lt.u32.totalorder %s5092_s29, %s6175_s18 }
 0x21d   : > { %p5094_p7 = pnand %p5093_p6, %p5222_p4 }
 0x21e   : > { %p5099_p12 = por %p5098_p11, %p5097_p10 }
 0x21f   : > { %p5095_p9 = pneg %p5094_p7 }
 0x220   : > { %p5101_p0 = por %p5100_p13, %p5099_p12 }
 0x222   : > { %p5102_p1 = pnand %p5101_p0, %p5095_p9 }
 0x224   : > { %5105 = shalt.err (!%p5102_p1)
}
 0x225   : > { %s5160_s30 = smov 128   ;;  %s5161_s7 = smov 8  }
 0x226   : > { %4743 = dma.vmem_to_hbm [thread:$0]  (%p5222_p4), %s6177_s9, 4096, %s6175_s18, %s6187_s15, %s5160_s30, %s5160_s30, %s5161_s7  }
 0x227 PF: > { %p4750_p2 = scmp.ge.s32.totalorder %s5156_s17, 2  ;;  %s3813_s8 = sand.u32 1, %s5136_s12  }
 0x228   : > { %s3814_s10 = scalar_lea.sflag [#allocation4], %s3813_s8 }
 0x229   : > { %p4746_p3 = pnand %p4750_p2, %p5229_p8 }
 0x22b   : > { %5131 = dma.done.wait (!%p4746_p3), %s3814_s10, 4096  }
 0x22c   : > { %5133 = vsyncadd (!%p4746_p3), %s3814_s10, 4294963200  ;;  %s16_s17 = sadd.s32 1, %s5156_s17   ;;  %s6239_s12 = smov %s5140_s13 }
 0x22d   : > { %p13_p5 = scmp.ge.s32.totalorder %s16_s17, 4   ;;  %s6240_s13 = smov %s5144_s14 }
 0x22e   : > { %s6241_s14 = smov %s5235_s25  ;;  %s6242_s15 = smov %s5152_s16 }
 0x22f   : > { %s6243_s16 = smov %s6245_s20  ;;  %15 = sbr.rel (!%p13_p5) target bundleno = 4 (0x4), region = 74 }
 0x236   :  { %3819 = vsyncpa [#allocation4], 1 }
 0x237   :  { %3821 = vsyncpa [#allocation4 + $0x1], 1 }

</bundles_post_ra>
